<compile_context>
chip_gen: v7x
topology: tpu7x:2x2x1
jax: 0.10.0
libtpu: 0.0.40
codegen_flags: <defaults>
</compile_context>

<pallas_src>
from functools import partial

import jax
import jax.numpy as jnp
import numpy as np
from jax.experimental import pallas as pl
from jax.experimental.pallas import tpu as pltpu


# ----------------------------- Pallas kernel ------------------------------- #
def speaker_kernel(
    x_ref, adapter_w_ref, adapter_b_ref,
    embih_ref, whh_ref, gates_b_ref,
    pol_w_ref, pol_b_ref, head2_w_ref, head2_b_ref,
    action_ref, logits_ref, q_ref, logprob_ref, entropy_ref, value_ref,
    h_scratch,
    *, msg_length, vocab_size, hidden,
):
    B = x_ref.shape[0]
    V = vocab_size
    H = hidden
    T = msg_length

    # ---- hoisted loop-invariant loads (the t-loop below is fully unrolled) --
    adapter_w = adapter_w_ref[...]     # [emb_img, 2H]
    adapter_b = adapter_b_ref[...]     # [1, 2H]
    embih = embih_ref[...]             # [V+1, 4H]  = emb @ W_ih, cols [i|f|o|g]
    whh = whh_ref[...]                 # [H, 4H]    cols [i|f|o|g]
    gates_b = gates_b_ref[...]         # [1, 4H]    = b_ih + b_hh, reordered
    pol_w = pol_w_ref[...]             # [H, V]
    pol_b = pol_b_ref[...]             # [1, V]

    iota_vp1 = jax.lax.broadcasted_iota(jnp.int32, (B, V + 1), 1)
    iota_v = jax.lax.broadcasted_iota(jnp.int32, (B, V), 1)

    # core_state_adapter: state = x @ W + b ; split into (h, c).
    state = (jnp.dot(x_ref[...], adapter_w,
                     preferred_element_type=jnp.float32) + adapter_b)
    h_t = state[:, :H]
    c_t = state[:, H:]

    # prev_token = vocab_size (<BOS> row) for every batch element, as one-hot.
    prev_onehot = (iota_vp1 == V).astype(jnp.float32)        # [B, V+1]

    # Pre-issued recurrent half of the gate pre-activations (off the
    # argmax -> one-hot critical path).
    hh_pre = jnp.dot(h_t, whh, preferred_element_type=jnp.float32) + gates_b

    for t in range(T):
        # Only the tiny K=V+1 one-hot matmul sits after the previous argmax.
        gates = (jnp.dot(prev_onehot, embih,
                         preferred_element_type=jnp.float32) + hh_pre)
        # Gate order [i | f | o | g]: one sigmoid slab + one tanh slab.
        sig = jax.nn.sigmoid(gates[:, :3 * H])
        g_g = jnp.tanh(gates[:, 3 * H:])
        i_g = sig[:, :H]
        f_g = sig[:, H:2 * H]
        o_g = sig[:, 2 * H:3 * H]
        c_t = f_g * c_t + i_g * g_g
        h_t = o_g * jnp.tanh(c_t)

        # Stash h_t for the vectorized post-loop head pass (static offsets).
        h_scratch[t * B:(t + 1) * B, :] = h_t

        # Recurrent matmul for the NEXT step — independent of the argmax chain,
        # so it overlaps with the policy head / argmax below.
        if t + 1 < T:
            hh_pre = (jnp.dot(h_t, whh,
                              preferred_element_type=jnp.float32) + gates_b)

        # Policy head + greedy action (first-occurrence argmax, like torch).
        policy_logits = (jnp.dot(h_t, pol_w,
                                 preferred_element_type=jnp.float32) + pol_b)
        logits_ref[t * B:(t + 1) * B, :] = policy_logits

        max_logit = jnp.max(policy_logits, axis=-1, keepdims=True)
        action = jnp.min(jnp.where(policy_logits >= max_logit, iota_v, V),
                         axis=-1, keepdims=True).astype(jnp.int32)   # [B, 1]
        action_ref[t * B:(t + 1) * B, :] = action

        prev_onehot = (iota_vp1 == action).astype(jnp.float32)

    # ---- vectorized post-loop pass over all T*B rows ------------------------
    h_all = h_scratch[...]                                   # [T*B, H]
    head2_w = head2_w_ref[...]                               # [H, V+2] = [val|vnet|adv]
    head2_b = head2_b_ref[...]                               # [1, V+2]
    heads = (jnp.dot(h_all, head2_w,
                     preferred_element_type=jnp.float32) + head2_b)
    value = heads[:, 0:1]                                    # [T*B, 1]
    state_value = heads[:, 1:2]                              # [T*B, 1]
    advantage = heads[:, 2:]                                 # [T*B, V]
    q_ref[...] = (state_value + advantage
                  - jnp.mean(advantage, axis=-1, keepdims=True))

    # Softmax statistics for all steps at once (read the logits slab back).
    L = logits_ref[...]                                      # [T*B, V]
    max_logit = jnp.max(L, axis=-1, keepdims=True)
    p = jnp.exp(L - max_logit)
    s = jnp.sum(p, axis=-1, keepdims=True)
    log_s = jnp.log(s)
    log_z = log_s + max_logit
    # chosen_logit == max_logit for the greedy action, so log-prob = -log(s).
    logprob_ref[...] = -log_s
    entropy_ref[...] = log_z - jnp.sum(p * L, axis=-1, keepdims=True) / s
    value_ref[...] = value


# ------------------------------- Wrapper ------------------------------------ #
def speaker_forward(x, params, *, msg_length, vocab_size, core_state_dim):
    (adapter_w, adapter_b, emb, w_ih, b_ih, w_hh, b_hh,
     pol_w, pol_b, val_w, val_b, vnet_w, vnet_b, adv_w, adv_b) = params
    B = x.shape[0]
    H = core_state_dim // 2
    V = vocab_size
    T = msg_length

    # Algebraic fusions / layout prep done ONCE outside the kernel.
    def reorder_gates(w):
        # PyTorch LSTM gate order [i|f|g|o] -> kernel order [i|f|o|g]
        i, f, g, o = jnp.split(w, 4, axis=-1)
        return jnp.concatenate([i, f, o, g], axis=-1)

    embih = reorder_gates(emb @ w_ih)                 # [V+1, 4H]
    whh_r = reorder_gates(w_hh)                       # [H, 4H]
    gates_b = reorder_gates(b_ih + b_hh)              # [1, 4H]
    head2_w = jnp.concatenate([val_w, vnet_w, adv_w], axis=1)   # [H, V+2]
    head2_b = jnp.concatenate([val_b, vnet_b, adv_b], axis=1)   # [1, V+2]

    out_shape = (
        jax.ShapeDtypeStruct((T * B, 1), jnp.int32),    # actions      (t-major)
        jax.ShapeDtypeStruct((T * B, V), jnp.float32),  # policy logits
        jax.ShapeDtypeStruct((T * B, V), jnp.float32),  # q values
        jax.ShapeDtypeStruct((T * B, 1), jnp.float32),  # log-prob
        jax.ShapeDtypeStruct((T * B, 1), jnp.float32),  # entropy
        jax.ShapeDtypeStruct((T * B, 1), jnp.float32),  # value
    )
    vmem = pl.BlockSpec(memory_space=pltpu.MemorySpace.VMEM)
    inputs = (x, adapter_w, adapter_b, embih, whh_r, gates_b,
              pol_w, pol_b, head2_w, head2_b)

    kernel = partial(speaker_kernel, msg_length=T, vocab_size=V, hidden=H)
    action, logits, q, logprob, entropy, value = pl.pallas_call(
        kernel,
        out_shape=out_shape,
        in_specs=[vmem] * len(inputs),
        out_specs=tuple([vmem] * len(out_shape)),
        scratch_shapes=[pltpu.VMEM((T * B, H), jnp.float32)],
    )(*inputs)

    # Unpack the T-major slabs into the PyTorch torch.stack(..., -1) layouts.
    action_l = action.reshape(T, B).T                                  # [B, T]
    policy_logits_l = jnp.transpose(logits.reshape(T, B, V), (1, 2, 0))  # [B, V, T]
    q_values_l = jnp.transpose(q.reshape(T, B, V), (1, 2, 0))            # [B, V, T]
    action_log_prob_l = logprob.reshape(T, B).T                          # [B, T]
    entropy_l = entropy.reshape(T, B).T                                  # [B, T]
    value_l = jnp.transpose(value.reshape(T, B, 1), (1, 2, 0))           # [B, 1, T]
    return (action_l, policy_logits_l, action_log_prob_l,
            entropy_l, q_values_l, value_l)


# ------------------------- Deterministic parameters ------------------------- #
def init_params(key, msg_length, vocab_size, emb_dim, emb_img, core_state_dim):
    H = core_state_dim // 2
    ks = jax.random.split(key, 8)

    def lin(k, fan_in, fan_out):
        kw, kb = jax.random.split(k)
        bound = 1.0 / np.sqrt(fan_in)
        w = jax.random.uniform(kw, (fan_in, fan_out), jnp.float32, -bound, bound)
        b = jax.random.uniform(kb, (1, fan_out), jnp.float32, -bound, bound)
        return w, b

    emb = jax.random.normal(ks[0], (vocab_size + 1, emb_dim), jnp.float32)
    adapter_w, adapter_b = lin(ks[1], emb_img, core_state_dim)
    w_ih, b_ih = lin(ks[2], msg_length, 4 * H)   # LSTMCell(input=msg_length)
    w_hh, b_hh = lin(ks[3], H, 4 * H)
    pol_w, pol_b = lin(ks[4], H, vocab_size)
    val_w, val_b = lin(ks[5], H, 1)
    vnet_w, vnet_b = lin(ks[6], H, 1)
    adv_w, adv_b = lin(ks[7], H, vocab_size)
    return (adapter_w, adapter_b, emb, w_ih, b_ih, w_hh, b_hh,
            pol_w, pol_b, val_w, val_b, vnet_w, vnet_b, adv_w, adv_b)


# --------------------------- Pure-JAX reference ------------------------------ #
def speaker_reference(x, params, *, msg_length, vocab_size, core_state_dim):
    (adapter_w, adapter_b, emb, w_ih, b_ih, w_hh, b_hh,
     pol_w, pol_b, val_w, val_b, vnet_w, vnet_b, adv_w, adv_b) = params
    H = core_state_dim // 2
    B = x.shape[0]
    state = x @ adapter_w + adapter_b
    h_t, c_t = state[:, :H], state[:, H:]
    prev = jnp.full((B,), vocab_size, dtype=jnp.int32)
    acc = [[] for _ in range(6)]
    for _ in range(msg_length):
        inp = emb[prev]
        gates = inp @ w_ih + b_ih + h_t @ w_hh + b_hh
        i = jax.nn.sigmoid(gates[:, :H]); f = jax.nn.sigmoid(gates[:, H:2 * H])
        g = jnp.tanh(gates[:, 2 * H:3 * H]); o = jax.nn.sigmoid(gates[:, 3 * H:])
        c_t = f * c_t + i * g
        h_t = o * jnp.tanh(c_t)
        logits = h_t @ pol_w + pol_b
        value = h_t @ val_w + val_b
        sv = h_t @ vnet_w + vnet_b
        adv = h_t @ adv_w + adv_b
        q = sv + adv - jnp.mean(adv, axis=-1, keepdims=True)
        action = jnp.argmax(logits, axis=-1).astype(jnp.int32)
        logp = jax.nn.log_softmax(logits, axis=-1)
        alp = jnp.take_along_axis(logp, action[:, None], axis=-1)[:, 0]
        ent = -jnp.sum(jnp.exp(logp) * logp, axis=-1)
        prev = action
        for lst, v in zip(acc, (action, logits, alp, ent, q, value)):
            lst.append(v)
    return tuple(jnp.stack(lst, axis=-1) for lst in acc)


# ----------------------------------- Main ------------------------------------ #
if __name__ == "__main__":
    # Small shapes consistent with the module (emb_dim must equal msg_length
    # for the original nn.LSTMCell(self.length, ...) to be well-formed).
    # batch=8 fills all 8 f32 sublanes (free win per the perf review).
    msg_length = 8
    vocab_size = 16
    emb_dim = 8
    emb_img = 32
    core_state_dim = 64
    batch = 8

    key = jax.random.PRNGKey(0)
    k_params, k_x = jax.random.split(key)
    params = init_params(k_params, msg_length, vocab_size, emb_dim,
                         emb_img, core_state_dim)
    x = jax.random.normal(k_x, (batch, emb_img), jnp.float32)

    outs = speaker_forward(x, params, msg_length=msg_length,
                           vocab_size=vocab_size, core_state_dim=core_state_dim)
    outs = jax.block_until_ready(outs)

    refs = speaker_reference(x, params, msg_length=msg_length,
                             vocab_size=vocab_size,
                             core_state_dim=core_state_dim)

    np.testing.assert_array_equal(np.asarray(outs[0]), np.asarray(refs[0]))
    for o, r in zip(outs[1:], refs[1:]):
        np.testing.assert_allclose(np.asarray(o), np.asarray(r),
                                   rtol=2e-4, atol=2e-4)

    print("KERNEL_OK")
</pallas_src>

<mosaic_0001>
module attributes {stable_mosaic.version = 11 : i64} {
  func.func @speaker_kernel(%arg0: memref<8x32xf32, #tpu.memory_space<vmem>>, %arg1: memref<32x64xf32, #tpu.memory_space<vmem>>, %arg2: memref<1x64xf32, #tpu.memory_space<vmem>>, %arg3: memref<17x128xf32, #tpu.memory_space<vmem>>, %arg4: memref<32x128xf32, #tpu.memory_space<vmem>>, %arg5: memref<1x128xf32, #tpu.memory_space<vmem>>, %arg6: memref<32x16xf32, #tpu.memory_space<vmem>>, %arg7: memref<1x16xf32, #tpu.memory_space<vmem>>, %arg8: memref<32x18xf32, #tpu.memory_space<vmem>>, %arg9: memref<1x18xf32, #tpu.memory_space<vmem>>, %arg10: memref<64x1xi32, #tpu.memory_space<vmem>>, %arg11: memref<64x16xf32, #tpu.memory_space<vmem>>, %arg12: memref<64x16xf32, #tpu.memory_space<vmem>>, %arg13: memref<64x1xf32, #tpu.memory_space<vmem>>, %arg14: memref<64x1xf32, #tpu.memory_space<vmem>>, %arg15: memref<64x1xf32, #tpu.memory_space<vmem>>, %arg16: memref<64x32xf32, #tpu.memory_space<vmem>>) attributes {dimension_semantics = [], scalar_prefetch = 0 : i64, scratch_operands = 1 : i64, tpu.core_type = #tpu.core_type<tc>} {
    %c0 = arith.constant 0 : index
    %c0_0 = arith.constant 0 : index
    %0 = vector.load %arg1[%c0, %c0_0] : memref<32x64xf32, #tpu.memory_space<vmem>>, vector<32x64xf32>
    %c0_1 = arith.constant 0 : index
    %c0_2 = arith.constant 0 : index
    %1 = vector.load %arg2[%c0_1, %c0_2] : memref<1x64xf32, #tpu.memory_space<vmem>>, vector<1x64xf32>
    %c0_3 = arith.constant 0 : index
    %c0_4 = arith.constant 0 : index
    %2 = vector.load %arg3[%c0_3, %c0_4] : memref<17x128xf32, #tpu.memory_space<vmem>>, vector<17x128xf32>
    %c0_5 = arith.constant 0 : index
    %c0_6 = arith.constant 0 : index
    %3 = vector.load %arg4[%c0_5, %c0_6] : memref<32x128xf32, #tpu.memory_space<vmem>>, vector<32x128xf32>
    %c0_7 = arith.constant 0 : index
    %c0_8 = arith.constant 0 : index
    %4 = vector.load %arg5[%c0_7, %c0_8] : memref<1x128xf32, #tpu.memory_space<vmem>>, vector<1x128xf32>
    %c0_9 = arith.constant 0 : index
    %c0_10 = arith.constant 0 : index
    %5 = vector.load %arg6[%c0_9, %c0_10] : memref<32x16xf32, #tpu.memory_space<vmem>>, vector<32x16xf32>
    %c0_11 = arith.constant 0 : index
    %c0_12 = arith.constant 0 : index
    %6 = vector.load %arg7[%c0_11, %c0_12] : memref<1x16xf32, #tpu.memory_space<vmem>>, vector<1x16xf32>
    %7 = tpu.iota {dimensions = array<i32: 1>} : vector<8x17xi32>
    %8 = tpu.iota {dimensions = array<i32: 1>} : vector<8x16xi32>
    %c0_13 = arith.constant 0 : index
    %c0_14 = arith.constant 0 : index
    %9 = vector.load %arg0[%c0_13, %c0_14] : memref<8x32xf32, #tpu.memory_space<vmem>>, vector<8x32xf32>
    %cst = arith.constant dense<0.000000e+00> : vector<8x64xf32>
    %10 = tpu.matmul %9, %0, %cst {dimension_numbers = #tpu.dot_dimension_numbers<[1], [0], [0], [1], [0, 0, 1, 1], [], []>} : vector<8x32xf32>, vector<32x64xf32>, vector<8x64xf32> -> vector<8x64xf32>
    %11 = vector.broadcast %1 : vector<1x64xf32> to vector<8x64xf32>
    %12 = arith.addf %10, %11 : vector<8x64xf32>
    %13 = vector.extract_strided_slice %12 {offsets = [0, 0], sizes = [8, 32], strides = [1, 1]} : vector<8x64xf32> to vector<8x32xf32>
    %14 = vector.extract_strided_slice %12 {offsets = [0, 32], sizes = [8, 32], strides = [1, 1]} : vector<8x64xf32> to vector<8x32xf32>
    %c16_i32 = arith.constant 16 : i32
    %15 = vector.broadcast %c16_i32 : i32 to vector<8x17xi32>
    %16 = arith.cmpi eq, %7, %15 : vector<8x17xi32>
    %17 = arith.extui %16 : vector<8x17xi1> to vector<8x17xi32>
    %18 = arith.sitofp %17 : vector<8x17xi32> to vector<8x17xf32>
    %cst_15 = arith.constant dense<0.000000e+00> : vector<8x128xf32>
    %19 = tpu.matmul %13, %3, %cst_15 {dimension_numbers = #tpu.dot_dimension_numbers<[1], [0], [0], [1], [0, 0, 1, 1], [], []>} : vector<8x32xf32>, vector<32x128xf32>, vector<8x128xf32> -> vector<8x128xf32>
    %20 = vector.broadcast %4 : vector<1x128xf32> to vector<8x128xf32>
    %21 = arith.addf %19, %20 : vector<8x128xf32>
    %cst_16 = arith.constant dense<0.000000e+00> : vector<8x128xf32>
    %22 = tpu.matmul %18, %2, %cst_16 {dimension_numbers = #tpu.dot_dimension_numbers<[1], [0], [0], [1], [0, 0, 1, 1], [], []>} : vector<8x17xf32>, vector<17x128xf32>, vector<8x128xf32> -> vector<8x128xf32>
    %23 = arith.addf %22, %21 : vector<8x128xf32>
    %24 = vector.extract_strided_slice %23 {offsets = [0, 0], sizes = [8, 96], strides = [1, 1]} : vector<8x128xf32> to vector<8x96xf32>
    %25 = arith.negf %24 : vector<8x96xf32>
    %26 = math.exp %25 : vector<8x96xf32>
    %cst_17 = arith.constant 1.000000e+00 : f32
    %27 = vector.broadcast %cst_17 : f32 to vector<8x96xf32>
    %28 = arith.addf %27, %26 : vector<8x96xf32>
    %29 = arith.divf %27, %28 : vector<8x96xf32>
    %30 = vector.extract_strided_slice %23 {offsets = [0, 96], sizes = [8, 32], strides = [1, 1]} : vector<8x128xf32> to vector<8x32xf32>
    %31 = math.tanh %30 : vector<8x32xf32>
    %32 = vector.extract_strided_slice %29 {offsets = [0, 0], sizes = [8, 32], strides = [1, 1]} : vector<8x96xf32> to vector<8x32xf32>
    %33 = vector.extract_strided_slice %29 {offsets = [0, 32], sizes = [8, 32], strides = [1, 1]} : vector<8x96xf32> to vector<8x32xf32>
    %34 = vector.extract_strided_slice %29 {offsets = [0, 64], sizes = [8, 32], strides = [1, 1]} : vector<8x96xf32> to vector<8x32xf32>
    %35 = arith.mulf %33, %14 : vector<8x32xf32>
    %36 = arith.mulf %32, %31 : vector<8x32xf32>
    %37 = arith.addf %35, %36 : vector<8x32xf32>
    %38 = math.tanh %37 : vector<8x32xf32>
    %39 = arith.mulf %34, %38 : vector<8x32xf32>
    %c0_18 = arith.constant 0 : index
    %c0_19 = arith.constant 0 : index
    %40 = vector.load %arg16[%c0_18, %c0_19] : memref<64x32xf32, #tpu.memory_space<vmem>>, vector<8x32xf32>
    tpu.vector_store %arg16[%c0_18, %c0_19], %39 {strides = array<i32>} : memref<64x32xf32, #tpu.memory_space<vmem>>, vector<8x32xf32>,
    %cst_20 = arith.constant dense<0.000000e+00> : vector<8x128xf32>
    %41 = tpu.matmul %39, %3, %cst_20 {dimension_numbers = #tpu.dot_dimension_numbers<[1], [0], [0], [1], [0, 0, 1, 1], [], []>} : vector<8x32xf32>, vector<32x128xf32>, vector<8x128xf32> -> vector<8x128xf32>
    %42 = vector.broadcast %4 : vector<1x128xf32> to vector<8x128xf32>
    %43 = arith.addf %41, %42 : vector<8x128xf32>
    %cst_21 = arith.constant dense<0.000000e+00> : vector<8x16xf32>
    %44 = tpu.matmul %39, %5, %cst_21 {dimension_numbers = #tpu.dot_dimension_numbers<[1], [0], [0], [1], [0, 0, 1, 1], [], []>} : vector<8x32xf32>, vector<32x16xf32>, vector<8x16xf32> -> vector<8x16xf32>
    %45 = vector.broadcast %6 : vector<1x16xf32> to vector<8x16xf32>
    %46 = arith.addf %44, %45 : vector<8x16xf32>
    %c0_22 = arith.constant 0 : index
    %c0_23 = arith.constant 0 : index
    %47 = vector.load %arg11[%c0_22, %c0_23] : memref<64x16xf32, #tpu.memory_space<vmem>>, vector<8x16xf32>
    tpu.vector_store %arg11[%c0_22, %c0_23], %46 {strides = array<i32>} : memref<64x16xf32, #tpu.memory_space<vmem>>, vector<8x16xf32>,
    %cst_24 = arith.constant dense<0xFF800000> : vector<8xf32>
    %48 = vector.multi_reduction <maximumf>, %46, %cst_24 [1] : vector<8x16xf32> to vector<8xf32>
    %49 = vector.shape_cast %48 : vector<8xf32> to vector<8x1xf32>
    %50 = vector.broadcast %49 : vector<8x1xf32> to vector<8x16xf32>
    %51 = arith.cmpf oge, %46, %50 : vector<8x16xf32>
    %c16_i32_25 = arith.constant 16 : i32
    %52 = vector.broadcast %c16_i32_25 : i32 to vector<8x16xi32>
    %53 = arith.select %51, %8, %52 : vector<8x16xi1>, vector<8x16xi32>
    %cst_26 = arith.constant dense<2147483647> : vector<8xi32>
    %54 = vector.multi_reduction <minsi>, %53, %cst_26 [1] : vector<8x16xi32> to vector<8xi32>
    %55 = vector.shape_cast %54 : vector<8xi32> to vector<8x1xi32>
    %c0_27 = arith.constant 0 : index
    %c0_28 = arith.constant 0 : index
    %56 = vector.load %arg10[%c0_27, %c0_28] : memref<64x1xi32, #tpu.memory_space<vmem>>, vector<8x1xi32>
    tpu.vector_store %arg10[%c0_27, %c0_28], %55 {strides = array<i32>} : memref<64x1xi32, #tpu.memory_space<vmem>>, vector<8x1xi32>,
    %57 = vector.broadcast %55 : vector<8x1xi32> to vector<8x17xi32>
    %58 = arith.cmpi eq, %7, %57 : vector<8x17xi32>
    %59 = arith.extui %58 : vector<8x17xi1> to vector<8x17xi32>
    %60 = arith.sitofp %59 : vector<8x17xi32> to vector<8x17xf32>
    %cst_29 = arith.constant dense<0.000000e+00> : vector<8x128xf32>
    %61 = tpu.matmul %60, %2, %cst_29 {dimension_numbers = #tpu.dot_dimension_numbers<[1], [0], [0], [1], [0, 0, 1, 1], [], []>} : vector<8x17xf32>, vector<17x128xf32>, vector<8x128xf32> -> vector<8x128xf32>
    %62 = arith.addf %61, %43 : vector<8x128xf32>
    %63 = vector.extract_strided_slice %62 {offsets = [0, 0], sizes = [8, 96], strides = [1, 1]} : vector<8x128xf32> to vector<8x96xf32>
    %64 = arith.negf %63 : vector<8x96xf32>
    %65 = math.exp %64 : vector<8x96xf32>
    %cst_30 = arith.constant 1.000000e+00 : f32
    %66 = vector.broadcast %cst_30 : f32 to vector<8x96xf32>
    %67 = arith.addf %66, %65 : vector<8x96xf32>
    %68 = arith.divf %66, %67 : vector<8x96xf32>
    %69 = vector.extract_strided_slice %62 {offsets = [0, 96], sizes = [8, 32], strides = [1, 1]} : vector<8x128xf32> to vector<8x32xf32>
    %70 = math.tanh %69 : vector<8x32xf32>
    %71 = vector.extract_strided_slice %68 {offsets = [0, 0], sizes = [8, 32], strides = [1, 1]} : vector<8x96xf32> to vector<8x32xf32>
    %72 = vector.extract_strided_slice %68 {offsets = [0, 32], sizes = [8, 32], strides = [1, 1]} : vector<8x96xf32> to vector<8x32xf32>
    %73 = vector.extract_strided_slice %68 {offsets = [0, 64], sizes = [8, 32], strides = [1, 1]} : vector<8x96xf32> to vector<8x32xf32>
    %74 = arith.mulf %72, %37 : vector<8x32xf32>
    %75 = arith.mulf %71, %70 : vector<8x32xf32>
    %76 = arith.addf %74, %75 : vector<8x32xf32>
    %77 = math.tanh %76 : vector<8x32xf32>
    %78 = arith.mulf %73, %77 : vector<8x32xf32>
    %c8 = arith.constant 8 : index
    %c0_31 = arith.constant 0 : index
    %79 = vector.load %arg16[%c8, %c0_31] : memref<64x32xf32, #tpu.memory_space<vmem>>, vector<8x32xf32>
    tpu.vector_store %arg16[%c8, %c0_31], %78 {strides = array<i32>} : memref<64x32xf32, #tpu.memory_space<vmem>>, vector<8x32xf32>,
    %cst_32 = arith.constant dense<0.000000e+00> : vector<8x128xf32>
    %80 = tpu.matmul %78, %3, %cst_32 {dimension_numbers = #tpu.dot_dimension_numbers<[1], [0], [0], [1], [0, 0, 1, 1], [], []>} : vector<8x32xf32>, vector<32x128xf32>, vector<8x128xf32> -> vector<8x128xf32>
    %81 = vector.broadcast %4 : vector<1x128xf32> to vector<8x128xf32>
    %82 = arith.addf %80, %81 : vector<8x128xf32>
    %cst_33 = arith.constant dense<0.000000e+00> : vector<8x16xf32>
    %83 = tpu.matmul %78, %5, %cst_33 {dimension_numbers = #tpu.dot_dimension_numbers<[1], [0], [0], [1], [0, 0, 1, 1], [], []>} : vector<8x32xf32>, vector<32x16xf32>, vector<8x16xf32> -> vector<8x16xf32>
    %84 = vector.broadcast %6 : vector<1x16xf32> to vector<8x16xf32>
    %85 = arith.addf %83, %84 : vector<8x16xf32>
    %c8_34 = arith.constant 8 : index
    %c0_35 = arith.constant 0 : index
    %86 = vector.load %arg11[%c8_34, %c0_35] : memref<64x16xf32, #tpu.memory_space<vmem>>, vector<8x16xf32>
    tpu.vector_store %arg11[%c8_34, %c0_35], %85 {strides = array<i32>} : memref<64x16xf32, #tpu.memory_space<vmem>>, vector<8x16xf32>,
    %cst_36 = arith.constant dense<0xFF800000> : vector<8xf32>
    %87 = vector.multi_reduction <maximumf>, %85, %cst_36 [1] : vector<8x16xf32> to vector<8xf32>
    %88 = vector.shape_cast %87 : vector<8xf32> to vector<8x1xf32>
    %89 = vector.broadcast %88 : vector<8x1xf32> to vector<8x16xf32>
    %90 = arith.cmpf oge, %85, %89 : vector<8x16xf32>
    %c16_i32_37 = arith.constant 16 : i32
    %91 = vector.broadcast %c16_i32_37 : i32 to vector<8x16xi32>
    %92 = arith.select %90, %8, %91 : vector<8x16xi1>, vector<8x16xi32>
    %cst_38 = arith.constant dense<2147483647> : vector<8xi32>
    %93 = vector.multi_reduction <minsi>, %92, %cst_38 [1] : vector<8x16xi32> to vector<8xi32>
    %94 = vector.shape_cast %93 : vector<8xi32> to vector<8x1xi32>
    %c8_39 = arith.constant 8 : index
    %c0_40 = arith.constant 0 : index
    %95 = vector.load %arg10[%c8_39, %c0_40] : memref<64x1xi32, #tpu.memory_space<vmem>>, vector<8x1xi32>
    tpu.vector_store %arg10[%c8_39, %c0_40], %94 {strides = array<i32>} : memref<64x1xi32, #tpu.memory_space<vmem>>, vector<8x1xi32>,
    %96 = vector.broadcast %94 : vector<8x1xi32> to vector<8x17xi32>
    %97 = arith.cmpi eq, %7, %96 : vector<8x17xi32>
    %98 = arith.extui %97 : vector<8x17xi1> to vector<8x17xi32>
    %99 = arith.sitofp %98 : vector<8x17xi32> to vector<8x17xf32>
    %cst_41 = arith.constant dense<0.000000e+00> : vector<8x128xf32>
    %100 = tpu.matmul %99, %2, %cst_41 {dimension_numbers = #tpu.dot_dimension_numbers<[1], [0], [0], [1], [0, 0, 1, 1], [], []>} : vector<8x17xf32>, vector<17x128xf32>, vector<8x128xf32> -> vector<8x128xf32>
    %101 = arith.addf %100, %82 : vector<8x128xf32>
    %102 = vector.extract_strided_slice %101 {offsets = [0, 0], sizes = [8, 96], strides = [1, 1]} : vector<8x128xf32> to vector<8x96xf32>
    %103 = arith.negf %102 : vector<8x96xf32>
    %104 = math.exp %103 : vector<8x96xf32>
    %cst_42 = arith.constant 1.000000e+00 : f32
    %105 = vector.broadcast %cst_42 : f32 to vector<8x96xf32>
    %106 = arith.addf %105, %104 : vector<8x96xf32>
    %107 = arith.divf %105, %106 : vector<8x96xf32>
    %108 = vector.extract_strided_slice %101 {offsets = [0, 96], sizes = [8, 32], strides = [1, 1]} : vector<8x128xf32> to vector<8x32xf32>
    %109 = math.tanh %108 : vector<8x32xf32>
    %110 = vector.extract_strided_slice %107 {offsets = [0, 0], sizes = [8, 32], strides = [1, 1]} : vector<8x96xf32> to vector<8x32xf32>
    %111 = vector.extract_strided_slice %107 {offsets = [0, 32], sizes = [8, 32], strides = [1, 1]} : vector<8x96xf32> to vector<8x32xf32>
    %112 = vector.extract_strided_slice %107 {offsets = [0, 64], sizes = [8, 32], strides = [1, 1]} : vector<8x96xf32> to vector<8x32xf32>
    %113 = arith.mulf %111, %76 : vector<8x32xf32>
    %114 = arith.mulf %110, %109 : vector<8x32xf32>
    %115 = arith.addf %113, %114 : vector<8x32xf32>
    %116 = math.tanh %115 : vector<8x32xf32>
    %117 = arith.mulf %112, %116 : vector<8x32xf32>
    %c16 = arith.constant 16 : index
    %c0_43 = arith.constant 0 : index
    %118 = vector.load %arg16[%c16, %c0_43] : memref<64x32xf32, #tpu.memory_space<vmem>>, vector<8x32xf32>
    tpu.vector_store %arg16[%c16, %c0_43], %117 {strides = array<i32>} : memref<64x32xf32, #tpu.memory_space<vmem>>, vector<8x32xf32>,
    %cst_44 = arith.constant dense<0.000000e+00> : vector<8x128xf32>
    %119 = tpu.matmul %117, %3, %cst_44 {dimension_numbers = #tpu.dot_dimension_numbers<[1], [0], [0], [1], [0, 0, 1, 1], [], []>} : vector<8x32xf32>, vector<32x128xf32>, vector<8x128xf32> -> vector<8x128xf32>
    %120 = vector.broadcast %4 : vector<1x128xf32> to vector<8x128xf32>
    %121 = arith.addf %119, %120 : vector<8x128xf32>
    %cst_45 = arith.constant dense<0.000000e+00> : vector<8x16xf32>
    %122 = tpu.matmul %117, %5, %cst_45 {dimension_numbers = #tpu.dot_dimension_numbers<[1], [0], [0], [1], [0, 0, 1, 1], [], []>} : vector<8x32xf32>, vector<32x16xf32>, vector<8x16xf32> -> vector<8x16xf32>
    %123 = vector.broadcast %6 : vector<1x16xf32> to vector<8x16xf32>
    %124 = arith.addf %122, %123 : vector<8x16xf32>
    %c16_46 = arith.constant 16 : index
    %c0_47 = arith.constant 0 : index
    %125 = vector.load %arg11[%c16_46, %c0_47] : memref<64x16xf32, #tpu.memory_space<vmem>>, vector<8x16xf32>
    tpu.vector_store %arg11[%c16_46, %c0_47], %124 {strides = array<i32>} : memref<64x16xf32, #tpu.memory_space<vmem>>, vector<8x16xf32>,
    %cst_48 = arith.constant dense<0xFF800000> : vector<8xf32>
    %126 = vector.multi_reduction <maximumf>, %124, %cst_48 [1] : vector<8x16xf32> to vector<8xf32>
    %127 = vector.shape_cast %126 : vector<8xf32> to vector<8x1xf32>
    %128 = vector.broadcast %127 : vector<8x1xf32> to vector<8x16xf32>
    %129 = arith.cmpf oge, %124, %128 : vector<8x16xf32>
    %c16_i32_49 = arith.constant 16 : i32
    %130 = vector.broadcast %c16_i32_49 : i32 to vector<8x16xi32>
    %131 = arith.select %129, %8, %130 : vector<8x16xi1>, vector<8x16xi32>
    %cst_50 = arith.constant dense<2147483647> : vector<8xi32>
    %132 = vector.multi_reduction <minsi>, %131, %cst_50 [1] : vector<8x16xi32> to vector<8xi32>
    %133 = vector.shape_cast %132 : vector<8xi32> to vector<8x1xi32>
    %c16_51 = arith.constant 16 : index
    %c0_52 = arith.constant 0 : index
    %134 = vector.load %arg10[%c16_51, %c0_52] : memref<64x1xi32, #tpu.memory_space<vmem>>, vector<8x1xi32>
    tpu.vector_store %arg10[%c16_51, %c0_52], %133 {strides = array<i32>} : memref<64x1xi32, #tpu.memory_space<vmem>>, vector<8x1xi32>,
    %135 = vector.broadcast %133 : vector<8x1xi32> to vector<8x17xi32>
    %136 = arith.cmpi eq, %7, %135 : vector<8x17xi32>
    %137 = arith.extui %136 : vector<8x17xi1> to vector<8x17xi32>
    %138 = arith.sitofp %137 : vector<8x17xi32> to vector<8x17xf32>
    %cst_53 = arith.constant dense<0.000000e+00> : vector<8x128xf32>
    %139 = tpu.matmul %138, %2, %cst_53 {dimension_numbers = #tpu.dot_dimension_numbers<[1], [0], [0], [1], [0, 0, 1, 1], [], []>} : vector<8x17xf32>, vector<17x128xf32>, vector<8x128xf32> -> vector<8x128xf32>
    %140 = arith.addf %139, %121 : vector<8x128xf32>
    %141 = vector.extract_strided_slice %140 {offsets = [0, 0], sizes = [8, 96], strides = [1, 1]} : vector<8x128xf32> to vector<8x96xf32>
    %142 = arith.negf %141 : vector<8x96xf32>
    %143 = math.exp %142 : vector<8x96xf32>
    %cst_54 = arith.constant 1.000000e+00 : f32
    %144 = vector.broadcast %cst_54 : f32 to vector<8x96xf32>
    %145 = arith.addf %144, %143 : vector<8x96xf32>
    %146 = arith.divf %144, %145 : vector<8x96xf32>
    %147 = vector.extract_strided_slice %140 {offsets = [0, 96], sizes = [8, 32], strides = [1, 1]} : vector<8x128xf32> to vector<8x32xf32>
    %148 = math.tanh %147 : vector<8x32xf32>
    %149 = vector.extract_strided_slice %146 {offsets = [0, 0], sizes = [8, 32], strides = [1, 1]} : vector<8x96xf32> to vector<8x32xf32>
    %150 = vector.extract_strided_slice %146 {offsets = [0, 32], sizes = [8, 32], strides = [1, 1]} : vector<8x96xf32> to vector<8x32xf32>
    %151 = vector.extract_strided_slice %146 {offsets = [0, 64], sizes = [8, 32], strides = [1, 1]} : vector<8x96xf32> to vector<8x32xf32>
    %152 = arith.mulf %150, %115 : vector<8x32xf32>
    %153 = arith.mulf %149, %148 : vector<8x32xf32>
    %154 = arith.addf %152, %153 : vector<8x32xf32>
    %155 = math.tanh %154 : vector<8x32xf32>
    %156 = arith.mulf %151, %155 : vector<8x32xf32>
    %c24 = arith.constant 24 : index
    %c0_55 = arith.constant 0 : index
    %157 = vector.load %arg16[%c24, %c0_55] : memref<64x32xf32, #tpu.memory_space<vmem>>, vector<8x32xf32>
    tpu.vector_store %arg16[%c24, %c0_55], %156 {strides = array<i32>} : memref<64x32xf32, #tpu.memory_space<vmem>>, vector<8x32xf32>,
    %cst_56 = arith.constant dense<0.000000e+00> : vector<8x128xf32>
    %158 = tpu.matmul %156, %3, %cst_56 {dimension_numbers = #tpu.dot_dimension_numbers<[1], [0], [0], [1], [0, 0, 1, 1], [], []>} : vector<8x32xf32>, vector<32x128xf32>, vector<8x128xf32> -> vector<8x128xf32>
    %159 = vector.broadcast %4 : vector<1x128xf32> to vector<8x128xf32>
    %160 = arith.addf %158, %159 : vector<8x128xf32>
    %cst_57 = arith.constant dense<0.000000e+00> : vector<8x16xf32>
    %161 = tpu.matmul %156, %5, %cst_57 {dimension_numbers = #tpu.dot_dimension_numbers<[1], [0], [0], [1], [0, 0, 1, 1], [], []>} : vector<8x32xf32>, vector<32x16xf32>, vector<8x16xf32> -> vector<8x16xf32>
    %162 = vector.broadcast %6 : vector<1x16xf32> to vector<8x16xf32>
    %163 = arith.addf %161, %162 : vector<8x16xf32>
    %c24_58 = arith.constant 24 : index
    %c0_59 = arith.constant 0 : index
    %164 = vector.load %arg11[%c24_58, %c0_59] : memref<64x16xf32, #tpu.memory_space<vmem>>, vector<8x16xf32>
    tpu.vector_store %arg11[%c24_58, %c0_59], %163 {strides = array<i32>} : memref<64x16xf32, #tpu.memory_space<vmem>>, vector<8x16xf32>,
    %cst_60 = arith.constant dense<0xFF800000> : vector<8xf32>
    %165 = vector.multi_reduction <maximumf>, %163, %cst_60 [1] : vector<8x16xf32> to vector<8xf32>
    %166 = vector.shape_cast %165 : vector<8xf32> to vector<8x1xf32>
    %167 = vector.broadcast %166 : vector<8x1xf32> to vector<8x16xf32>
    %168 = arith.cmpf oge, %163, %167 : vector<8x16xf32>
    %c16_i32_61 = arith.constant 16 : i32
    %169 = vector.broadcast %c16_i32_61 : i32 to vector<8x16xi32>
    %170 = arith.select %168, %8, %169 : vector<8x16xi1>, vector<8x16xi32>
    %cst_62 = arith.constant dense<2147483647> : vector<8xi32>
    %171 = vector.multi_reduction <minsi>, %170, %cst_62 [1] : vector<8x16xi32> to vector<8xi32>
    %172 = vector.shape_cast %171 : vector<8xi32> to vector<8x1xi32>
    %c24_63 = arith.constant 24 : index
    %c0_64 = arith.constant 0 : index
    %173 = vector.load %arg10[%c24_63, %c0_64] : memref<64x1xi32, #tpu.memory_space<vmem>>, vector<8x1xi32>
    tpu.vector_store %arg10[%c24_63, %c0_64], %172 {strides = array<i32>} : memref<64x1xi32, #tpu.memory_space<vmem>>, vector<8x1xi32>,
    %174 = vector.broadcast %172 : vector<8x1xi32> to vector<8x17xi32>
    %175 = arith.cmpi eq, %7, %174 : vector<8x17xi32>
    %176 = arith.extui %175 : vector<8x17xi1> to vector<8x17xi32>
    %177 = arith.sitofp %176 : vector<8x17xi32> to vector<8x17xf32>
    %cst_65 = arith.constant dense<0.000000e+00> : vector<8x128xf32>
    %178 = tpu.matmul %177, %2, %cst_65 {dimension_numbers = #tpu.dot_dimension_numbers<[1], [0], [0], [1], [0, 0, 1, 1], [], []>} : vector<8x17xf32>, vector<17x128xf32>, vector<8x128xf32> -> vector<8x128xf32>
    %179 = arith.addf %178, %160 : vector<8x128xf32>
    %180 = vector.extract_strided_slice %179 {offsets = [0, 0], sizes = [8, 96], strides = [1, 1]} : vector<8x128xf32> to vector<8x96xf32>
    %181 = arith.negf %180 : vector<8x96xf32>
    %182 = math.exp %181 : vector<8x96xf32>
    %cst_66 = arith.constant 1.000000e+00 : f32
    %183 = vector.broadcast %cst_66 : f32 to vector<8x96xf32>
    %184 = arith.addf %183, %182 : vector<8x96xf32>
    %185 = arith.divf %183, %184 : vector<8x96xf32>
    %186 = vector.extract_strided_slice %179 {offsets = [0, 96], sizes = [8, 32], strides = [1, 1]} : vector<8x128xf32> to vector<8x32xf32>
    %187 = math.tanh %186 : vector<8x32xf32>
    %188 = vector.extract_strided_slice %185 {offsets = [0, 0], sizes = [8, 32], strides = [1, 1]} : vector<8x96xf32> to vector<8x32xf32>
    %189 = vector.extract_strided_slice %185 {offsets = [0, 32], sizes = [8, 32], strides = [1, 1]} : vector<8x96xf32> to vector<8x32xf32>
    %190 = vector.extract_strided_slice %185 {offsets = [0, 64], sizes = [8, 32], strides = [1, 1]} : vector<8x96xf32> to vector<8x32xf32>
    %191 = arith.mulf %189, %154 : vector<8x32xf32>
    %192 = arith.mulf %188, %187 : vector<8x32xf32>
    %193 = arith.addf %191, %192 : vector<8x32xf32>
    %194 = math.tanh %193 : vector<8x32xf32>
    %195 = arith.mulf %190, %194 : vector<8x32xf32>
    %c32 = arith.constant 32 : index
    %c0_67 = arith.constant 0 : index
    %196 = vector.load %arg16[%c32, %c0_67] : memref<64x32xf32, #tpu.memory_space<vmem>>, vector<8x32xf32>
    tpu.vector_store %arg16[%c32, %c0_67], %195 {strides = array<i32>} : memref<64x32xf32, #tpu.memory_space<vmem>>, vector<8x32xf32>,
    %cst_68 = arith.constant dense<0.000000e+00> : vector<8x128xf32>
    %197 = tpu.matmul %195, %3, %cst_68 {dimension_numbers = #tpu.dot_dimension_numbers<[1], [0], [0], [1], [0, 0, 1, 1], [], []>} : vector<8x32xf32>, vector<32x128xf32>, vector<8x128xf32> -> vector<8x128xf32>
    %198 = vector.broadcast %4 : vector<1x128xf32> to vector<8x128xf32>
    %199 = arith.addf %197, %198 : vector<8x128xf32>
    %cst_69 = arith.constant dense<0.000000e+00> : vector<8x16xf32>
    %200 = tpu.matmul %195, %5, %cst_69 {dimension_numbers = #tpu.dot_dimension_numbers<[1], [0], [0], [1], [0, 0, 1, 1], [], []>} : vector<8x32xf32>, vector<32x16xf32>, vector<8x16xf32> -> vector<8x16xf32>
    %201 = vector.broadcast %6 : vector<1x16xf32> to vector<8x16xf32>
    %202 = arith.addf %200, %201 : vector<8x16xf32>
    %c32_70 = arith.constant 32 : index
    %c0_71 = arith.constant 0 : index
    %203 = vector.load %arg11[%c32_70, %c0_71] : memref<64x16xf32, #tpu.memory_space<vmem>>, vector<8x16xf32>
    tpu.vector_store %arg11[%c32_70, %c0_71], %202 {strides = array<i32>} : memref<64x16xf32, #tpu.memory_space<vmem>>, vector<8x16xf32>,
    %cst_72 = arith.constant dense<0xFF800000> : vector<8xf32>
    %204 = vector.multi_reduction <maximumf>, %202, %cst_72 [1] : vector<8x16xf32> to vector<8xf32>
    %205 = vector.shape_cast %204 : vector<8xf32> to vector<8x1xf32>
    %206 = vector.broadcast %205 : vector<8x1xf32> to vector<8x16xf32>
    %207 = arith.cmpf oge, %202, %206 : vector<8x16xf32>
    %c16_i32_73 = arith.constant 16 : i32
    %208 = vector.broadcast %c16_i32_73 : i32 to vector<8x16xi32>
    %209 = arith.select %207, %8, %208 : vector<8x16xi1>, vector<8x16xi32>
    %cst_74 = arith.constant dense<2147483647> : vector<8xi32>
    %210 = vector.multi_reduction <minsi>, %209, %cst_74 [1] : vector<8x16xi32> to vector<8xi32>
    %211 = vector.shape_cast %210 : vector<8xi32> to vector<8x1xi32>
    %c32_75 = arith.constant 32 : index
    %c0_76 = arith.constant 0 : index
    %212 = vector.load %arg10[%c32_75, %c0_76] : memref<64x1xi32, #tpu.memory_space<vmem>>, vector<8x1xi32>
    tpu.vector_store %arg10[%c32_75, %c0_76], %211 {strides = array<i32>} : memref<64x1xi32, #tpu.memory_space<vmem>>, vector<8x1xi32>,
    %213 = vector.broadcast %211 : vector<8x1xi32> to vector<8x17xi32>
    %214 = arith.cmpi eq, %7, %213 : vector<8x17xi32>
    %215 = arith.extui %214 : vector<8x17xi1> to vector<8x17xi32>
    %216 = arith.sitofp %215 : vector<8x17xi32> to vector<8x17xf32>
    %cst_77 = arith.constant dense<0.000000e+00> : vector<8x128xf32>
    %217 = tpu.matmul %216, %2, %cst_77 {dimension_numbers = #tpu.dot_dimension_numbers<[1], [0], [0], [1], [0, 0, 1, 1], [], []>} : vector<8x17xf32>, vector<17x128xf32>, vector<8x128xf32> -> vector<8x128xf32>
    %218 = arith.addf %217, %199 : vector<8x128xf32>
    %219 = vector.extract_strided_slice %218 {offsets = [0, 0], sizes = [8, 96], strides = [1, 1]} : vector<8x128xf32> to vector<8x96xf32>
    %220 = arith.negf %219 : vector<8x96xf32>
    %221 = math.exp %220 : vector<8x96xf32>
    %cst_78 = arith.constant 1.000000e+00 : f32
    %222 = vector.broadcast %cst_78 : f32 to vector<8x96xf32>
    %223 = arith.addf %222, %221 : vector<8x96xf32>
    %224 = arith.divf %222, %223 : vector<8x96xf32>
    %225 = vector.extract_strided_slice %218 {offsets = [0, 96], sizes = [8, 32], strides = [1, 1]} : vector<8x128xf32> to vector<8x32xf32>
    %226 = math.tanh %225 : vector<8x32xf32>
    %227 = vector.extract_strided_slice %224 {offsets = [0, 0], sizes = [8, 32], strides = [1, 1]} : vector<8x96xf32> to vector<8x32xf32>
    %228 = vector.extract_strided_slice %224 {offsets = [0, 32], sizes = [8, 32], strides = [1, 1]} : vector<8x96xf32> to vector<8x32xf32>
    %229 = vector.extract_strided_slice %224 {offsets = [0, 64], sizes = [8, 32], strides = [1, 1]} : vector<8x96xf32> to vector<8x32xf32>
    %230 = arith.mulf %228, %193 : vector<8x32xf32>
    %231 = arith.mulf %227, %226 : vector<8x32xf32>
    %232 = arith.addf %230, %231 : vector<8x32xf32>
    %233 = math.tanh %232 : vector<8x32xf32>
    %234 = arith.mulf %229, %233 : vector<8x32xf32>
    %c40 = arith.constant 40 : index
    %c0_79 = arith.constant 0 : index
    %235 = vector.load %arg16[%c40, %c0_79] : memref<64x32xf32, #tpu.memory_space<vmem>>, vector<8x32xf32>
    tpu.vector_store %arg16[%c40, %c0_79], %234 {strides = array<i32>} : memref<64x32xf32, #tpu.memory_space<vmem>>, vector<8x32xf32>,
    %cst_80 = arith.constant dense<0.000000e+00> : vector<8x128xf32>
    %236 = tpu.matmul %234, %3, %cst_80 {dimension_numbers = #tpu.dot_dimension_numbers<[1], [0], [0], [1], [0, 0, 1, 1], [], []>} : vector<8x32xf32>, vector<32x128xf32>, vector<8x128xf32> -> vector<8x128xf32>
    %237 = vector.broadcast %4 : vector<1x128xf32> to vector<8x128xf32>
    %238 = arith.addf %236, %237 : vector<8x128xf32>
    %cst_81 = arith.constant dense<0.000000e+00> : vector<8x16xf32>
    %239 = tpu.matmul %234, %5, %cst_81 {dimension_numbers = #tpu.dot_dimension_numbers<[1], [0], [0], [1], [0, 0, 1, 1], [], []>} : vector<8x32xf32>, vector<32x16xf32>, vector<8x16xf32> -> vector<8x16xf32>
    %240 = vector.broadcast %6 : vector<1x16xf32> to vector<8x16xf32>
    %241 = arith.addf %239, %240 : vector<8x16xf32>
    %c40_82 = arith.constant 40 : index
    %c0_83 = arith.constant 0 : index
    %242 = vector.load %arg11[%c40_82, %c0_83] : memref<64x16xf32, #tpu.memory_space<vmem>>, vector<8x16xf32>
    tpu.vector_store %arg11[%c40_82, %c0_83], %241 {strides = array<i32>} : memref<64x16xf32, #tpu.memory_space<vmem>>, vector<8x16xf32>,
    %cst_84 = arith.constant dense<0xFF800000> : vector<8xf32>
    %243 = vector.multi_reduction <maximumf>, %241, %cst_84 [1] : vector<8x16xf32> to vector<8xf32>
    %244 = vector.shape_cast %243 : vector<8xf32> to vector<8x1xf32>
    %245 = vector.broadcast %244 : vector<8x1xf32> to vector<8x16xf32>
    %246 = arith.cmpf oge, %241, %245 : vector<8x16xf32>
    %c16_i32_85 = arith.constant 16 : i32
    %247 = vector.broadcast %c16_i32_85 : i32 to vector<8x16xi32>
    %248 = arith.select %246, %8, %247 : vector<8x16xi1>, vector<8x16xi32>
    %cst_86 = arith.constant dense<2147483647> : vector<8xi32>
    %249 = vector.multi_reduction <minsi>, %248, %cst_86 [1] : vector<8x16xi32> to vector<8xi32>
    %250 = vector.shape_cast %249 : vector<8xi32> to vector<8x1xi32>
    %c40_87 = arith.constant 40 : index
    %c0_88 = arith.constant 0 : index
    %251 = vector.load %arg10[%c40_87, %c0_88] : memref<64x1xi32, #tpu.memory_space<vmem>>, vector<8x1xi32>
    tpu.vector_store %arg10[%c40_87, %c0_88], %250 {strides = array<i32>} : memref<64x1xi32, #tpu.memory_space<vmem>>, vector<8x1xi32>,
    %252 = vector.broadcast %250 : vector<8x1xi32> to vector<8x17xi32>
    %253 = arith.cmpi eq, %7, %252 : vector<8x17xi32>
    %254 = arith.extui %253 : vector<8x17xi1> to vector<8x17xi32>
    %255 = arith.sitofp %254 : vector<8x17xi32> to vector<8x17xf32>
    %cst_89 = arith.constant dense<0.000000e+00> : vector<8x128xf32>
    %256 = tpu.matmul %255, %2, %cst_89 {dimension_numbers = #tpu.dot_dimension_numbers<[1], [0], [0], [1], [0, 0, 1, 1], [], []>} : vector<8x17xf32>, vector<17x128xf32>, vector<8x128xf32> -> vector<8x128xf32>
    %257 = arith.addf %256, %238 : vector<8x128xf32>
    %258 = vector.extract_strided_slice %257 {offsets = [0, 0], sizes = [8, 96], strides = [1, 1]} : vector<8x128xf32> to vector<8x96xf32>
    %259 = arith.negf %258 : vector<8x96xf32>
    %260 = math.exp %259 : vector<8x96xf32>
    %cst_90 = arith.constant 1.000000e+00 : f32
    %261 = vector.broadcast %cst_90 : f32 to vector<8x96xf32>
    %262 = arith.addf %261, %260 : vector<8x96xf32>
    %263 = arith.divf %261, %262 : vector<8x96xf32>
    %264 = vector.extract_strided_slice %257 {offsets = [0, 96], sizes = [8, 32], strides = [1, 1]} : vector<8x128xf32> to vector<8x32xf32>
    %265 = math.tanh %264 : vector<8x32xf32>
    %266 = vector.extract_strided_slice %263 {offsets = [0, 0], sizes = [8, 32], strides = [1, 1]} : vector<8x96xf32> to vector<8x32xf32>
    %267 = vector.extract_strided_slice %263 {offsets = [0, 32], sizes = [8, 32], strides = [1, 1]} : vector<8x96xf32> to vector<8x32xf32>
    %268 = vector.extract_strided_slice %263 {offsets = [0, 64], sizes = [8, 32], strides = [1, 1]} : vector<8x96xf32> to vector<8x32xf32>
    %269 = arith.mulf %267, %232 : vector<8x32xf32>
    %270 = arith.mulf %266, %265 : vector<8x32xf32>
    %271 = arith.addf %269, %270 : vector<8x32xf32>
    %272 = math.tanh %271 : vector<8x32xf32>
    %273 = arith.mulf %268, %272 : vector<8x32xf32>
    %c48 = arith.constant 48 : index
    %c0_91 = arith.constant 0 : index
    %274 = vector.load %arg16[%c48, %c0_91] : memref<64x32xf32, #tpu.memory_space<vmem>>, vector<8x32xf32>
    tpu.vector_store %arg16[%c48, %c0_91], %273 {strides = array<i32>} : memref<64x32xf32, #tpu.memory_space<vmem>>, vector<8x32xf32>,
    %cst_92 = arith.constant dense<0.000000e+00> : vector<8x128xf32>
    %275 = tpu.matmul %273, %3, %cst_92 {dimension_numbers = #tpu.dot_dimension_numbers<[1], [0], [0], [1], [0, 0, 1, 1], [], []>} : vector<8x32xf32>, vector<32x128xf32>, vector<8x128xf32> -> vector<8x128xf32>
    %276 = vector.broadcast %4 : vector<1x128xf32> to vector<8x128xf32>
    %277 = arith.addf %275, %276 : vector<8x128xf32>
    %cst_93 = arith.constant dense<0.000000e+00> : vector<8x16xf32>
    %278 = tpu.matmul %273, %5, %cst_93 {dimension_numbers = #tpu.dot_dimension_numbers<[1], [0], [0], [1], [0, 0, 1, 1], [], []>} : vector<8x32xf32>, vector<32x16xf32>, vector<8x16xf32> -> vector<8x16xf32>
    %279 = vector.broadcast %6 : vector<1x16xf32> to vector<8x16xf32>
    %280 = arith.addf %278, %279 : vector<8x16xf32>
    %c48_94 = arith.constant 48 : index
    %c0_95 = arith.constant 0 : index
    %281 = vector.load %arg11[%c48_94, %c0_95] : memref<64x16xf32, #tpu.memory_space<vmem>>, vector<8x16xf32>
    tpu.vector_store %arg11[%c48_94, %c0_95], %280 {strides = array<i32>} : memref<64x16xf32, #tpu.memory_space<vmem>>, vector<8x16xf32>,
    %cst_96 = arith.constant dense<0xFF800000> : vector<8xf32>
    %282 = vector.multi_reduction <maximumf>, %280, %cst_96 [1] : vector<8x16xf32> to vector<8xf32>
    %283 = vector.shape_cast %282 : vector<8xf32> to vector<8x1xf32>
    %284 = vector.broadcast %283 : vector<8x1xf32> to vector<8x16xf32>
    %285 = arith.cmpf oge, %280, %284 : vector<8x16xf32>
    %c16_i32_97 = arith.constant 16 : i32
    %286 = vector.broadcast %c16_i32_97 : i32 to vector<8x16xi32>
    %287 = arith.select %285, %8, %286 : vector<8x16xi1>, vector<8x16xi32>
    %cst_98 = arith.constant dense<2147483647> : vector<8xi32>
    %288 = vector.multi_reduction <minsi>, %287, %cst_98 [1] : vector<8x16xi32> to vector<8xi32>
    %289 = vector.shape_cast %288 : vector<8xi32> to vector<8x1xi32>
    %c48_99 = arith.constant 48 : index
    %c0_100 = arith.constant 0 : index
    %290 = vector.load %arg10[%c48_99, %c0_100] : memref<64x1xi32, #tpu.memory_space<vmem>>, vector<8x1xi32>
    tpu.vector_store %arg10[%c48_99, %c0_100], %289 {strides = array<i32>} : memref<64x1xi32, #tpu.memory_space<vmem>>, vector<8x1xi32>,
    %291 = vector.broadcast %289 : vector<8x1xi32> to vector<8x17xi32>
    %292 = arith.cmpi eq, %7, %291 : vector<8x17xi32>
    %293 = arith.extui %292 : vector<8x17xi1> to vector<8x17xi32>
    %294 = arith.sitofp %293 : vector<8x17xi32> to vector<8x17xf32>
    %cst_101 = arith.constant dense<0.000000e+00> : vector<8x128xf32>
    %295 = tpu.matmul %294, %2, %cst_101 {dimension_numbers = #tpu.dot_dimension_numbers<[1], [0], [0], [1], [0, 0, 1, 1], [], []>} : vector<8x17xf32>, vector<17x128xf32>, vector<8x128xf32> -> vector<8x128xf32>
    %296 = arith.addf %295, %277 : vector<8x128xf32>
    %297 = vector.extract_strided_slice %296 {offsets = [0, 0], sizes = [8, 96], strides = [1, 1]} : vector<8x128xf32> to vector<8x96xf32>
    %298 = arith.negf %297 : vector<8x96xf32>
    %299 = math.exp %298 : vector<8x96xf32>
    %cst_102 = arith.constant 1.000000e+00 : f32
    %300 = vector.broadcast %cst_102 : f32 to vector<8x96xf32>
    %301 = arith.addf %300, %299 : vector<8x96xf32>
    %302 = arith.divf %300, %301 : vector<8x96xf32>
    %303 = vector.extract_strided_slice %296 {offsets = [0, 96], sizes = [8, 32], strides = [1, 1]} : vector<8x128xf32> to vector<8x32xf32>
    %304 = math.tanh %303 : vector<8x32xf32>
    %305 = vector.extract_strided_slice %302 {offsets = [0, 0], sizes = [8, 32], strides = [1, 1]} : vector<8x96xf32> to vector<8x32xf32>
    %306 = vector.extract_strided_slice %302 {offsets = [0, 32], sizes = [8, 32], strides = [1, 1]} : vector<8x96xf32> to vector<8x32xf32>
    %307 = vector.extract_strided_slice %302 {offsets = [0, 64], sizes = [8, 32], strides = [1, 1]} : vector<8x96xf32> to vector<8x32xf32>
    %308 = arith.mulf %306, %271 : vector<8x32xf32>
    %309 = arith.mulf %305, %304 : vector<8x32xf32>
    %310 = arith.addf %308, %309 : vector<8x32xf32>
    %311 = math.tanh %310 : vector<8x32xf32>
    %312 = arith.mulf %307, %311 : vector<8x32xf32>
    %c56 = arith.constant 56 : index
    %c0_103 = arith.constant 0 : index
    %313 = vector.load %arg16[%c56, %c0_103] : memref<64x32xf32, #tpu.memory_space<vmem>>, vector<8x32xf32>
    tpu.vector_store %arg16[%c56, %c0_103], %312 {strides = array<i32>} : memref<64x32xf32, #tpu.memory_space<vmem>>, vector<8x32xf32>,
    %cst_104 = arith.constant dense<0.000000e+00> : vector<8x16xf32>
    %314 = tpu.matmul %312, %5, %cst_104 {dimension_numbers = #tpu.dot_dimension_numbers<[1], [0], [0], [1], [0, 0, 1, 1], [], []>} : vector<8x32xf32>, vector<32x16xf32>, vector<8x16xf32> -> vector<8x16xf32>
    %315 = vector.broadcast %6 : vector<1x16xf32> to vector<8x16xf32>
    %316 = arith.addf %314, %315 : vector<8x16xf32>
    %c56_105 = arith.constant 56 : index
    %c0_106 = arith.constant 0 : index
    %317 = vector.load %arg11[%c56_105, %c0_106] : memref<64x16xf32, #tpu.memory_space<vmem>>, vector<8x16xf32>
    tpu.vector_store %arg11[%c56_105, %c0_106], %316 {strides = array<i32>} : memref<64x16xf32, #tpu.memory_space<vmem>>, vector<8x16xf32>,
    %cst_107 = arith.constant dense<0xFF800000> : vector<8xf32>
    %318 = vector.multi_reduction <maximumf>, %316, %cst_107 [1] : vector<8x16xf32> to vector<8xf32>
    %319 = vector.shape_cast %318 : vector<8xf32> to vector<8x1xf32>
    %320 = vector.broadcast %319 : vector<8x1xf32> to vector<8x16xf32>
    %321 = arith.cmpf oge, %316, %320 : vector<8x16xf32>
    %c16_i32_108 = arith.constant 16 : i32
    %322 = vector.broadcast %c16_i32_108 : i32 to vector<8x16xi32>
    %323 = arith.select %321, %8, %322 : vector<8x16xi1>, vector<8x16xi32>
    %cst_109 = arith.constant dense<2147483647> : vector<8xi32>
    %324 = vector.multi_reduction <minsi>, %323, %cst_109 [1] : vector<8x16xi32> to vector<8xi32>
    %325 = vector.shape_cast %324 : vector<8xi32> to vector<8x1xi32>
    %c56_110 = arith.constant 56 : index
    %c0_111 = arith.constant 0 : index
    %326 = vector.load %arg10[%c56_110, %c0_111] : memref<64x1xi32, #tpu.memory_space<vmem>>, vector<8x1xi32>
    tpu.vector_store %arg10[%c56_110, %c0_111], %325 {strides = array<i32>} : memref<64x1xi32, #tpu.memory_space<vmem>>, vector<8x1xi32>,
    %c0_112 = arith.constant 0 : index
    %c0_113 = arith.constant 0 : index
    %327 = vector.load %arg16[%c0_112, %c0_113] : memref<64x32xf32, #tpu.memory_space<vmem>>, vector<64x32xf32>
    %c0_114 = arith.constant 0 : index
    %c0_115 = arith.constant 0 : index
    %328 = vector.load %arg8[%c0_114, %c0_115] : memref<32x18xf32, #tpu.memory_space<vmem>>, vector<32x18xf32>
    %c0_116 = arith.constant 0 : index
    %c0_117 = arith.constant 0 : index
    %329 = vector.load %arg9[%c0_116, %c0_117] : memref<1x18xf32, #tpu.memory_space<vmem>>, vector<1x18xf32>
    %cst_118 = arith.constant dense<0.000000e+00> : vector<64x18xf32>
    %330 = tpu.matmul %327, %328, %cst_118 {dimension_numbers = #tpu.dot_dimension_numbers<[1], [0], [0], [1], [0, 0, 1, 1], [], []>} : vector<64x32xf32>, vector<32x18xf32>, vector<64x18xf32> -> vector<64x18xf32>
    %331 = vector.broadcast %329 : vector<1x18xf32> to vector<64x18xf32>
    %332 = arith.addf %330, %331 : vector<64x18xf32>
    %333 = vector.extract_strided_slice %332 {offsets = [0, 0], sizes = [64, 1], strides = [1, 1]} : vector<64x18xf32> to vector<64x1xf32>
    %334 = vector.extract_strided_slice %332 {offsets = [0, 1], sizes = [64, 1], strides = [1, 1]} : vector<64x18xf32> to vector<64x1xf32>
    %335 = vector.extract_strided_slice %332 {offsets = [0, 2], sizes = [64, 16], strides = [1, 1]} : vector<64x18xf32> to vector<64x16xf32>
    %336 = vector.broadcast %334 : vector<64x1xf32> to vector<64x16xf32>
    %337 = arith.addf %336, %335 : vector<64x16xf32>
    %cst_119 = arith.constant dense<0.000000e+00> : vector<64xf32>
    %338 = vector.multi_reduction <add>, %335, %cst_119 [1] : vector<64x16xf32> to vector<64xf32>
    %339 = vector.shape_cast %338 : vector<64xf32> to vector<64x1xf32>
    %cst_120 = arith.constant 1.600000e+01 : f32
    %340 = vector.broadcast %cst_120 : f32 to vector<64x1xf32>
    %341 = arith.divf %339, %340 : vector<64x1xf32>
    %342 = vector.broadcast %341 : vector<64x1xf32> to vector<64x16xf32>
    %343 = arith.subf %337, %342 : vector<64x16xf32>
    %c0_121 = arith.constant 0 : index
    %c0_122 = arith.constant 0 : index
    %344 = vector.load %arg12[%c0_121, %c0_122] : memref<64x16xf32, #tpu.memory_space<vmem>>, vector<64x16xf32>
    tpu.vector_store %arg12[%c0_121, %c0_122], %343 {strides = array<i32>} : memref<64x16xf32, #tpu.memory_space<vmem>>, vector<64x16xf32>,
    %c0_123 = arith.constant 0 : index
    %c0_124 = arith.constant 0 : index
    %345 = vector.load %arg11[%c0_123, %c0_124] : memref<64x16xf32, #tpu.memory_space<vmem>>, vector<64x16xf32>
    %cst_125 = arith.constant dense<0xFF800000> : vector<64xf32>
    %346 = vector.multi_reduction <maximumf>, %345, %cst_125 [1] : vector<64x16xf32> to vector<64xf32>
    %347 = vector.shape_cast %346 : vector<64xf32> to vector<64x1xf32>
    %348 = vector.broadcast %347 : vector<64x1xf32> to vector<64x16xf32>
    %349 = arith.subf %345, %348 : vector<64x16xf32>
    %350 = math.exp %349 : vector<64x16xf32>
    %cst_126 = arith.constant dense<0.000000e+00> : vector<64xf32>
    %351 = vector.multi_reduction <add>, %350, %cst_126 [1] : vector<64x16xf32> to vector<64xf32>
    %352 = vector.shape_cast %351 : vector<64xf32> to vector<64x1xf32>
    %353 = math.log %352 : vector<64x1xf32>
    %354 = arith.addf %353, %347 : vector<64x1xf32>
    %cst_127 = arith.constant 0.000000e+00 : f32
    %355 = vector.broadcast %cst_127 : f32 to vector<64x1xf32>
    %356 = arith.subf %355, %353 : vector<64x1xf32>
    %c0_128 = arith.constant 0 : index
    %c0_129 = arith.constant 0 : index
    %357 = vector.load %arg13[%c0_128, %c0_129] : memref<64x1xf32, #tpu.memory_space<vmem>>, vector<64x1xf32>
    tpu.vector_store %arg13[%c0_128, %c0_129], %356 {strides = array<i32>} : memref<64x1xf32, #tpu.memory_space<vmem>>, vector<64x1xf32>,
    %358 = arith.mulf %350, %345 : vector<64x16xf32>
    %cst_130 = arith.constant dense<0.000000e+00> : vector<64xf32>
    %359 = vector.multi_reduction <add>, %358, %cst_130 [1] : vector<64x16xf32> to vector<64xf32>
    %360 = vector.shape_cast %359 : vector<64xf32> to vector<64x1xf32>
    %361 = arith.divf %360, %352 : vector<64x1xf32>
    %362 = arith.subf %354, %361 : vector<64x1xf32>
    %c0_131 = arith.constant 0 : index
    %c0_132 = arith.constant 0 : index
    %363 = vector.load %arg14[%c0_131, %c0_132] : memref<64x1xf32, #tpu.memory_space<vmem>>, vector<64x1xf32>
    tpu.vector_store %arg14[%c0_131, %c0_132], %362 {strides = array<i32>} : memref<64x1xf32, #tpu.memory_space<vmem>>, vector<64x1xf32>,
    %c0_133 = arith.constant 0 : index
    %c0_134 = arith.constant 0 : index
    %364 = vector.load %arg15[%c0_133, %c0_134] : memref<64x1xf32, #tpu.memory_space<vmem>>, vector<64x1xf32>
    tpu.vector_store %arg15[%c0_133, %c0_134], %333 {strides = array<i32>} : memref<64x1xf32, #tpu.memory_space<vmem>>, vector<64x1xf32>,
    return
  }
}

</mosaic_0001>

<bundles_post_ra>
// kernel: tpu_custom_call.1
= control target key start
LH: loop header
LB: loop body
LE: loop exit
PB: predicated region body
PF: predicated region fallthrough
CT: control target
= control target key end

     0   :  { %21 = vsyncpa [#allocation4], 0  ;;  %s3620_s18 = smov [#allocation3]   ;;  %s4551_s0 = inlined_call_operand.hbm [shape: f32[8,32], index: 0, kind: input, shape index: {}]   ;;  %s4552_s1 = inlined_call_operand.vmem [shape: f32[32,64], index: 1, kind: input, shape index: {}]   ;;  %s4553_s2 = inlined_call_operand.vmem [shape: f32[1,64], index: 2, kind: input, shape index: {}]   ;;  %s4554_s3 = inlined_call_operand.vmem [shape: f32[17,128], index: 3, kind: input, shape index: {}]   ;;  %s4555_s4 = inlined_call_operand.vmem [shape: f32[32,128], index: 4, kind: input, shape index: {}]   ;;  %s4556_s5 = inlined_call_operand.vmem [shape: f32[1,128], index: 5, kind: input, shape index: {}]   ;;  %s4557_s6 = inlined_call_operand.vmem [shape: f32[32,16], index: 6, kind: input, shape index: {}]   ;;  %s4558_s7 = inlined_call_operand.vmem [shape: f32[1,16], index: 7, kind: input, shape index: {}]   ;;  %s4559_s8 = inlined_call_operand.vmem [shape: f32[32,18], index: 8, kind: input, shape index: {}]   ;;  %s4560_s9 = inlined_call_operand.vmem [shape: f32[1,18], index: 9, kind: input, shape index: {}]   ;;  %s4561_s10 = inlined_call_operand.vmem [shape: s32[64,1], index: 10, kind: output, shape index: {0}]   ;;  %s4562_s11 = inlined_call_operand.vmem [shape: f32[64,16], index: 11, kind: output, shape index: {1}]   ;;  %s4563_s12 = inlined_call_operand.vmem [shape: f32[64,16], index: 12, kind: output, shape index: {2}]   ;;  %s4564_s13 = inlined_call_operand.vmem [shape: f32[64,1], index: 13, kind: output, shape index: {3}]   ;;  %s4565_s14 = inlined_call_operand.vmem [shape: f32[64,1], index: 14, kind: output, shape index: {4}]   ;;  %s4566_s15 = inlined_call_operand.vmem [shape: f32[64,1], index: 15, kind: output, shape index: {5}]  }
   0x1   :  { %s28_s19 = sshll.u32 %s3620_s18, 4  ;;  %s3596_s22 = scalar_lea.hbm %s4551_s0, 128  ;;  %s29_s19 = int_to_ptr.vmem [resolvable:$true] %s28_s19 }
   0x2   :  { %p3597_p0 = scmp.ne.s32.totalorder %s4551_s0, %s3596_s22  ;;  %p3600_p1 = scmp.lt.u32.totalorder %s3596_s22, %s4551_s0 }
   0x4   :  { %p3602_p2 = pnand %p3600_p1, %p3597_p0 }
   0x6   :  { %3605 = shalt.err (!%p3602_p2)
}
   0x7   :  { %s3606_s27 = scalar_lea.vmem %s29_s19, 128  ;;  %p3611_p4 = scmp.lt.s32.totalorder %s29_s19, %s29_s19 }
   0x8   :  { %p3607_p3 = scmp.ne.s32.totalorder %s29_s19, %s3606_s27  ;;  %p3612_p5 = scmp.lt.s32.totalorder %s3606_s27, %s3606_s27 }
   0xa   :  { %p3613_p6 = por %p3612_p5, %p3611_p4 }
   0xc   :  { %p3614_p7 = pnand %p3613_p6, %p3607_p3 }
   0xe   :  { %3617 = shalt.err (!%p3614_p7)
}
   0xf   :  { %31 = dma.hbm_to_vmem [thread:$0]  %s4551_s0, 128, %s29_s19, [#allocation4]  }
  0x10   :  { %3618 = dma.done.wait [#allocation4], 128  }
  0x11   :  { %3619 = vsyncadd [#allocation4], 4294967168  ;;  %v3621_v0 = vmov 0.0|0.0   ;;  %vm3622_vm0 = vmmov 0   ;;  %v3623_v1 = vmov 0.0   ;;  %v53_v2 = vld [vmem:[%s4552_s1] sm:$0xff]  ;;  %v71_v18 = vlaneseq }
  0x12   :  { %3315 = vmatprep.subr.bf16.mxu0 %v3621_v0  ;;  %3044 = vmatprep.mubr.msk.f32.mxu0 %vm3622_vm0, %v3623_v1  ;;  %v54_v3 = vld [vmem:[%s4552_s1 + $0x8] sm:$0xff]  ;;  %v55_v4 = vld [vmem:[%s4552_s1 + $0x10] sm:$0xff]  ;;  %v56_v6 = vld [vmem:[%s4552_s1 + $0x18] sm:$0xff]  ;;  %vm80_vm1 = vcmask 261120   ;;  %vm240_vm2 = vcmask 1040384   ;;  %vm236_vm4 = vcmask 138240  }
  0x13   :  { %3321 = vmatprep.subr.bf16.mxu1 %v3621_v0  ;;  %3055 = vmatprep.mubr.msk.f32.mxu1 %vm3622_vm0, %v3623_v1  ;;  %v3316_v5 = vpack.c.bf16 %v54_v3, %v53_v2  ;;  %v61_v7 = vld [vmem:[%s4555_s4] sm:$0xff]  ;;  %v62_v8 = vld [vmem:[%s4555_s4 + $0x8] sm:$0xff]  ;;  %v3319_v9 = vpack.c.bf16 %v56_v6, %v55_v4  ;;  %v63_v15 = vld [vmem:[%s4555_s4 + $0x10] sm:$0xff]  ;;  %v3772_v19 = vand.u32 127, %v71_v18  ;;  %s3625_s1 = smov 64   ;;  %vm491_vm5 = vcmask 130048  }
  0x14   :  { %v3744_v10 = vpack.c.bf16 %v62_v8, %v61_v7  ;;  %v58_v11 = vld [vmem:[%s4554_s3] sm:$0xff]  ;;  %v59_v12 = vld [vmem:[%s4554_s3 + $0x8] sm:$0xff]  ;;  %v64_v16 = vld [vmem:[%s4555_s4 + $0x18] sm:$0xff]  ;;  %vm513_vm8 = vcmask 7168  }
  0x15   :  { %3317 = vmatpush3.bf16.msra.mxu0 %v3316_v5  ;;  %v73_v13 = vld [vmem:[#allocation3] sm:$0xff]  ;;  %v3755_v14 = vpack.c.bf16 %v59_v12, %v58_v11  ;;  %v3769_v17 = vpack.c.bf16 %v64_v16, %v63_v15  ;;  %v3778_v20 = vld [vmem:[%s4554_s3 + $0x10] sm:$0x1]  ;;  %vm154_vm3 = vcmp.eq.s32.totalorder %v3772_v19, 16  ;;  %v67_v44 = vld [vmem:[%s4557_s6 + $0x8] sm:$0xff] }
  0x16   :  { %3318 = vmatprep.subr.bf16.mxu0 %v3621_v0  ;;  %3323 = vmatpush3.bf16.msra.mxu1 %v3744_v10  ;;  %v2848_v21 = vsel %vm154_vm3, 1.0, %v3623_v1  ;;  %v2846_v22 = vld [vmem:[%s4553_s2] ss:$0 sm:$0xff]  ;;  %s3624_s2 = smov 32   ;;  %v68_v45 = vld [vmem:[%s4557_s6 + $0x10] sm:$0xff]  ;;  %v69_v47 = vld [vmem:[%s4557_s6 + $0x18] sm:$0xff] }
  0x17   :  { %3324 = vmatprep.subr.bf16.mxu1 %v3621_v0  ;;  %v3801_v28 = vld [vmem:[%s4556_s5] ss:$0 sm:$0xff]  ;;  %v3824_v48 = vpack.c.bf16 %v69_v47, %v68_v45 }
  0x18   :  { %v66_v43 = vld [vmem:[%s4557_s6] sm:$0xff] }
  0x19   :  { %3320 = vmatpush3.bf16.msra.mxu0 %v3319_v9  ;;  %v3818_v46 = vpack.c.bf16 %v67_v44, %v66_v43  ;;  %v3850_v53 = vld [vmem:[%s4558_s7] ss:$0 sm:$0xff] }
  0x1a   :  { %3327 = vmatprep.subr.bf16.mxu0 %v3621_v0  ;;  %3326 = vmatpush3.bf16.msra.mxu1 %v3769_v17 }
  0x1b   :  { %3336 = vmatprep.subr.bf16.mxu1 %v3621_v0 }
  0x1c   :  { %3045 = vmatmul.mubr.msk.f32.vlgmr.msra.gmra.mrb[0].mxu0 %vm80_vm1, %v73_v13 }
  0x1d   :  { %3329 = vmatpush3.bf16.msra.mxu0 %v3755_v14  ;;  %3064 = vmatprep.mubr.msk.f32.mxu0 %vm3622_vm0, %v3623_v1 }
  0x1e   :  { %3062 = vmatprep.subr.mxu0 %v3623_v1 }
  0x21   :  { %3063 = vmatpush3.msk.msra.mxu0 %vm240_vm2, %v3778_v20 }
  0x22   :  { %3065 = vmatmul.mubr.msk.f32.vlgmr.msra.gmra.mrb[2].mxu0 %vm236_vm4, %v2848_v21  ;;  %3330 = vmatprep.subr.bf16.mxu0 %v3621_v0 }
  0x23   :  { %3332 = vmatpush3.bf16.msra.mxu0 %v3744_v10  ;;  %3075 = vmatprep.mubr.msk.f32.mxu0 %vm3622_vm0, %v3623_v1 }
  0x24   :  { %3333 = vmatprep.subr.bf16.mxu0 %v3621_v0 }
  0x27   :  { %3335 = vmatpush3.bf16.msra.mxu0 %v3769_v17 }
  0x28   :  { %3342 = vmatprep.subr.bf16.mxu0 %v3621_v0 }
  0xef   :  { %v150_v23 = vpop.f32.mrb[0].mxu0 }
  0xf0   :  { %v151_v24 = vadd.f32 %v2846_v22, %v150_v23  ;;  %v3046_v25 = vpop.f32.mrb[1].mxu0 }
  0xf2   :  { %3056 = vmatmul.mubr.msk.f32.vlgmr.msra.gmra.mrb[0].mxu1 %vm80_vm1, %v151_v24 }
  0xf3   :  { %3086 = vmatprep.mubr.msk.f32.mxu1 %vm3622_vm0, %v3623_v1  ;;  %3338 = vmatpush3.bf16.msra.mxu1 %v3818_v46 }
  0xf4   :  { %3339 = vmatprep.subr.bf16.mxu1 %v3621_v0 }
  0xf5   :  { %v310_v26 = vpop.f32.mrb[2].mxu0 }
  0xf6   :  { %v3066_v27 = vpop.f32.mrb[3].mxu0 }
  0xf7   :  { %3341 = vmatpush3.bf16.msra.mxu1 %v3824_v48 }
  0xf8   :  { %3351 = vmatprep.subr.bf16.mxu1 %v3621_v0 }
 0x1c5   :  { %v232_v29 = vpop.f32.mrb[0].mxu1 }
 0x1c6   :  { %v233_v30 = vadd.f32 %v3801_v28, %v232_v29  ;;  %v3057_v31 = vpop.f32.mrb[1].mxu1 }
 0x1c8   :  { %v311_v32 = vadd.f32 %v310_v26, %v233_v30 }
 0x1ca   :  { %3482 = vtanh.f32 %v311_v32  ;;  %v2853_v34 = vmul.f32 -1.442695, %v311_v32 }
 0x1cc   :  { %3484 = vpow2.f32 %v2853_v34 }
 0x1d4   :  { %v3483_v33 = vpop.eup %3482 }
 0x1d5   :  { %323 = vrot.lane.b32.xlu0 %v3483_v33, %s3624_s2 }
 0x1d6   :  { %v3485_v35 = vpop.eup %3484 }
 0x1d7   :  { %v317_v36 = vadd.f32 1.0, %v3485_v35 }
 0x1d9   :  { %3486 = vrcp.f32 %v317_v36 }
 0x1e3   :  { %v3487_v37 = vpop.eup %3486 }
 0x1e4   :  { %v321_v40 = vmul.f32 %v3487_v37, %v151_v24 }
 0x247   :  { %v324_v38 = vpop.permute.xlu0 %323 }
 0x248   :  { %v326_v39 = vmul.f32 %v3487_v37, %v324_v38 }
 0x24a   :  { %328 = vrot.lane.b32.xlu0 %v326_v39, %s3624_s2 }
 0x2bc   :  { %v329_v41 = vpop.permute.xlu0 %328 }
 0x2bd   :  { %v3806_v42 = vadd.f32 %v329_v41, %v321_v40 }
 0x2bf   :  { %3488 = vtanh.f32 %v3806_v42 }
 0x2c9   :  { %v3489_v49 = vpop.eup %3488 }
 0x2ca   :  { %334 = vrot.lane.b32.xlu1 %v3489_v49, %s3624_s2 }
 0x33c   :  { %v335_v50 = vpop.permute.xlu1 %334 }
 0x33d   :  { %v337_v51 = vmul.f32 %v3487_v37, %v335_v50 }
 0x33f   :  { %339 = vrot.lane.b32.xlu1 %v337_v51, %s3625_s1 }
 0x3b1   :  { %v340_v52 = vpop.permute.xlu1 %339 }
 0x3b2   :  { %342 = vst.msk [vmem:[#allocation2] sm:$0xff] %vm80_vm1, %v340_v52  ;;  %3076 = vmatmul.mubr.msk.f32.vlgmr.msra.gmra.mrb[4].mxu0 %vm80_vm1, %v340_v52  ;;  %3087 = vmatmul.mubr.msk.f32.vlgmr.msra.gmra.mrb[2].mxu1 %vm80_vm1, %v340_v52 }
 0x3b3   :  { %3344 = vmatpush3.bf16.msra.mxu0 %v3755_v14  ;;  %3095 = vmatprep.mubr.msk.f32.mxu0 %vm3622_vm0, %v3623_v1 }
 0x3b4   :  { %3093 = vmatprep.subr.mxu0 %v3623_v1  ;;  %3353 = vmatpush3.bf16.msra.mxu1 %v3818_v46 }
 0x3b5   :  { %3354 = vmatprep.subr.bf16.mxu1 %v3621_v0  ;;  %3117 = vmatprep.mubr.msk.f32.mxu1 %vm3622_vm0, %v3623_v1 }
 0x3b7   :  { %3094 = vmatpush3.msk.msra.mxu0 %vm240_vm2, %v3778_v20 }
 0x3b8   :  { %3345 = vmatprep.subr.bf16.mxu0 %v3621_v0  ;;  %3356 = vmatpush3.bf16.msra.mxu1 %v3824_v48 }
 0x3b9   :  { %3360 = vmatprep.subr.bf16.mxu1 %v3621_v0 }
 0x485   :  { %v487_v54 = vpop.f32.mrb[2].mxu1 }
 0x486   :  { %v488_v55 = vadd.f32 %v3850_v53, %v487_v54  ;;  %v3088_v56 = vpop.f32.mrb[3].mxu1 }
 0x488   :  { %492 = vst.msk [vmem:[%s4562_s11] sm:$0xff] %vm491_vm5, %v488_v55  ;;  %v493_v57 = vsel %vm491_vm5, %v488_v55, -inf }
 0x489   :  { %494 = vmax.xlane.f32.xlu0 %v493_v57 }
 0x516   :  { %v495_v58 = vpop.xlane.xlu0 %494 }
 0x517   :  { %vm496_vm6 = vcmp.ge.f32.partialorder %v488_v55, %v495_v58 }
 0x518   :  { %v497_v59 = vsel %vm496_vm6, %v3772_v19, 16 }
 0x519   :  { %v498_v60 = vsel %vm491_vm5, %v497_v59, 2147483647 }
 0x51a   :  { %v500_v61 = vshra.s32 %v498_v60, 16  ;;  %v499_v63 = vand.u32 65535, %v498_v60 }
 0x51c   :  { %v502_v62 = vcvt.s32.f32 %v500_v61  ;;  %v501_v3 = vcvt.s32.f32 %v499_v63 }
 0x51e   :  { %503 = vmin.xlane.f32.xlu1 %v502_v62 }
 0x5ab   :  { %v504_v2 = vpop.xlane.xlu1 %503 }
 0x5ac   :  { %vm505_vm7 = vcmp.eq.f32.partialorder %v502_v62, %v504_v2  ;;  %v510_v5 = vcvt.f32.s32 %v504_v2 }
 0x5ad   :  { %v506_v4 = vsel %vm505_vm7, %v501_v3, inf }
 0x5ae   :  { %507 = vmin.xlane.f32.xlu0 %v506_v4  ;;  %v511_v7 = vshll.u32 %v510_v5, 16 }
 0x63b   :  { %v508_v6 = vpop.xlane.xlu0 %507 }
 0x63c   :  { %v509_v8 = vcvt.f32.s32 %v508_v6 }
 0x63e   :  { %v512_v9 = vadd.s32 %v511_v7, %v509_v8 }
 0x640   :  { %514 = vst.msk [vmem:[%s4561_s10] sm:$0xff] %vm513_vm8, %v512_v9  ;;  %vm515_vm9 = vcmp.eq.s32.totalorder %v3772_v19, %v512_v9 }
 0x641   :  { %v2857_v11 = vsel %vm515_vm9, 1.0, %v3623_v1 }
 0x642   :  { %3096 = vmatmul.mubr.msk.f32.vlgmr.msra.gmra.mrb[4].mxu0 %vm236_vm4, %v2857_v11 }
 0x643   :  { %3347 = vmatpush3.bf16.msra.mxu0 %v3744_v10  ;;  %3106 = vmatprep.mubr.msk.f32.mxu0 %vm3622_vm0, %v3623_v1 }
 0x644   :  { %3348 = vmatprep.subr.bf16.mxu0 %v3621_v0 }
 0x647   :  { %3350 = vmatpush3.bf16.msra.mxu0 %v3769_v17 }
 0x648   :  { %3357 = vmatprep.subr.bf16.mxu0 %v3621_v0 }
 0x715   :  { %v587_v12 = vpop.f32.mrb[4].mxu0 }
 0x716   :  { %v3451_v13 = vadd.f32 %v3801_v28, %v587_v12  ;;  %v3097_v15 = vpop.f32.mrb[5].mxu0 }
 0x718   :  { %3490 = vtanh.f32 %v3451_v13  ;;  %v2860_v18 = vmul.f32 -1.442695, %v3451_v13 }
 0x71a   :  { %3492 = vpow2.f32 %v2860_v18 }
 0x722   :  { %v3491_v16 = vpop.eup %3490 }
 0x723   :  { %600 = vrot.lane.b32.xlu0 %v3491_v16, %s3624_s2 }
 0x724   :  { %v3493_v21 = vpop.eup %3492 }
 0x725   :  { %v594_v22 = vadd.f32 1.0, %v3493_v21 }
 0x727   :  { %3494 = vrcp.f32 %v594_v22 }
 0x731   :  { %v3495_v23 = vpop.eup %3494 }
 0x732   :  { %v598_v26 = vmul.f32 %v3495_v23, %v3806_v42 }
 0x795   :  { %v601_v24 = vpop.permute.xlu0 %600 }
 0x796   :  { %v603_v25 = vmul.f32 %v3495_v23, %v601_v24 }
 0x798   :  { %605 = vrot.lane.b32.xlu1 %v603_v25, %s3624_s2 }
 0x80a   :  { %v606_v27 = vpop.permute.xlu1 %605 }
 0x80b   :  { %v3877_v29 = vadd.f32 %v606_v27, %v598_v26 }
 0x80d   :  { %3496 = vtanh.f32 %v3877_v29 }
 0x817   :  { %v3497_v30 = vpop.eup %3496 }
 0x818   :  { %611 = vrot.lane.b32.xlu1 %v3497_v30, %s3624_s2 }
 0x88a   :  { %v612_v31 = vpop.permute.xlu1 %611 }
 0x88b   :  { %v614_v32 = vmul.f32 %v3495_v23, %v612_v31 }
 0x88d   :  { %616 = vrot.lane.b32.xlu0 %v614_v32, %s3625_s1 }
 0x8ff   :  { %v617_v33 = vpop.permute.xlu0 %616 }
 0x900   :  { %619 = vst.msk [vmem:[#allocation2 + $0x8] sm:$0xff] %vm80_vm1, %v617_v33  ;;  %3107 = vmatmul.mubr.msk.f32.vlgmr.msra.gmra.mrb[6].mxu0 %vm80_vm1, %v617_v33  ;;  %3118 = vmatmul.mubr.msk.f32.vlgmr.msra.gmra.mrb[4].mxu1 %vm80_vm1, %v617_v33 }
 0x901   :  { %3359 = vmatpush3.bf16.msra.mxu0 %v3755_v14  ;;  %3126 = vmatprep.mubr.msk.f32.mxu0 %vm3622_vm0, %v3623_v1 }
 0x902   :  { %3124 = vmatprep.subr.mxu0 %v3623_v1  ;;  %3362 = vmatpush3.bf16.msra.mxu1 %v3744_v10 }
 0x903   :  { %3363 = vmatprep.subr.bf16.mxu1 %v3621_v0  ;;  %3137 = vmatprep.mubr.msk.f32.mxu1 %vm3622_vm0, %v3623_v1 }
 0x905   :  { %3125 = vmatpush3.msk.msra.mxu0 %vm240_vm2, %v3778_v20 }
 0x906   :  { %3366 = vmatprep.subr.bf16.mxu0 %v3621_v0  ;;  %3365 = vmatpush3.bf16.msra.mxu1 %v3769_v17 }
 0x907   :  { %3372 = vmatprep.subr.bf16.mxu1 %v3621_v0 }
 0x9d3   :  { %v758_v34 = vpop.f32.mrb[4].mxu1 }
 0x9d4   :  { %v759_v35 = vadd.f32 %v3850_v53, %v758_v34  ;;  %v3119_v36 = vpop.f32.mrb[5].mxu1 }
 0x9d6   :  { %762 = vst.msk [vmem:[%s4562_s11 + $0x8] sm:$0xff] %vm491_vm5, %v759_v35  ;;  %v763_v37 = vsel %vm491_vm5, %v759_v35, -inf }
 0x9d7   :  { %764 = vmax.xlane.f32.xlu1 %v763_v37 }
 0xa64   :  { %v765_v38 = vpop.xlane.xlu1 %764 }
 0xa65   :  { %vm766_vm10 = vcmp.ge.f32.partialorder %v759_v35, %v765_v38 }
 0xa66   :  { %v767_v39 = vsel %vm766_vm10, %v3772_v19, 16 }
 0xa67   :  { %v768_v40 = vsel %vm491_vm5, %v767_v39, 2147483647 }
 0xa68   :  { %v770_v41 = vshra.s32 %v768_v40, 16  ;;  %v769_v43 = vand.u32 65535, %v768_v40 }
 0xa6a   :  { %v772_v42 = vcvt.s32.f32 %v770_v41  ;;  %v771_v45 = vcvt.s32.f32 %v769_v43 }
 0xa6c   :  { %773 = vmin.xlane.f32.xlu0 %v772_v42 }
 0xaf9   :  { %v774_v44 = vpop.xlane.xlu0 %773 }
 0xafa   :  { %vm775_vm11 = vcmp.eq.f32.partialorder %v772_v42, %v774_v44  ;;  %v780_v49 = vcvt.f32.s32 %v774_v44 }
 0xafb   :  { %v776_v47 = vsel %vm775_vm11, %v771_v45, inf }
 0xafc   :  { %777 = vmin.xlane.f32.xlu0 %v776_v47  ;;  %v781_v51 = vshll.u32 %v780_v49, 16 }
 0xb89   :  { %v778_v50 = vpop.xlane.xlu0 %777 }
 0xb8a   :  { %v779_v52 = vcvt.f32.s32 %v778_v50 }
 0xb8c   :  { %v782_v54 = vadd.s32 %v781_v51, %v779_v52 }
 0xb8e   :  { %783 = vst.msk [vmem:[%s4561_s10 + $0x8] sm:$0xff] %vm513_vm8, %v782_v54  ;;  %vm784_vm12 = vcmp.eq.s32.totalorder %v3772_v19, %v782_v54 }
 0xb8f   :  { %v2863_v55 = vsel %vm784_vm12, 1.0, %v3623_v1 }
 0xb90   :  { %3127 = vmatmul.mubr.msk.f32.vlgmr.msra.gmra.mrb[6].mxu0 %vm236_vm4, %v2863_v55 }
 0xb91   :  { %3368 = vmatpush3.bf16.msra.mxu0 %v3818_v46  ;;  %3148 = vmatprep.mubr.msk.f32.mxu0 %vm3622_vm0, %v3623_v1 }
 0xb92   :  { %3369 = vmatprep.subr.bf16.mxu0 %v3621_v0 }
 0xb95   :  { %3371 = vmatpush3.bf16.msra.mxu0 %v3824_v48 }
 0xb96   :  { %3375 = vmatprep.subr.bf16.mxu0 %v3621_v0 }
 0xc63   :  { %v856_v56 = vpop.f32.mrb[6].mxu0 }
 0xc64   :  { %v3452_v57 = vadd.f32 %v3801_v28, %v856_v56  ;;  %v3128_v58 = vpop.f32.mrb[7].mxu0 }
 0xc66   :  { %3498 = vtanh.f32 %v3452_v57  ;;  %v2866_v60 = vmul.f32 -1.442695, %v3452_v57 }
 0xc68   :  { %3500 = vpow2.f32 %v2866_v60 }
 0xc70   :  { %v3499_v59 = vpop.eup %3498 }
 0xc71   :  { %869 = vrot.lane.b32.xlu1 %v3499_v59, %s3624_s2 }
 0xc72   :  { %v3501_v61 = vpop.eup %3500 }
 0xc73   :  { %v863_v62 = vadd.f32 1.0, %v3501_v61 }
 0xc75   :  { %3502 = vrcp.f32 %v863_v62 }
 0xc7f   :  { %v3503_v63 = vpop.eup %3502 }
 0xc80   :  { %v867_v4 = vmul.f32 %v3503_v63, %v3877_v29 }
 0xce3   :  { %v870_v2 = vpop.permute.xlu1 %869 }
 0xce4   :  { %v872_v3 = vmul.f32 %v3503_v63, %v870_v2 }
 0xce6   :  { %874 = vrot.lane.b32.xlu0 %v872_v3, %s3624_s2 }
 0xd58   :  { %v875_v5 = vpop.permute.xlu0 %874 }
 0xd59   :  { %v3923_v6 = vadd.f32 %v875_v5, %v867_v4 }
 0xd5b   :  { %3504 = vtanh.f32 %v3923_v6 }
 0xd65   :  { %v3505_v7 = vpop.eup %3504 }
 0xd66   :  { %880 = vrot.lane.b32.xlu1 %v3505_v7, %s3624_s2 }
 0xdd8   :  { %v881_v8 = vpop.permute.xlu1 %880 }
 0xdd9   :  { %v883_v9 = vmul.f32 %v3503_v63, %v881_v8 }
 0xddb   :  { %885 = vrot.lane.b32.xlu1 %v883_v9, %s3625_s1 }
 0xe4d   :  { %v886_v11 = vpop.permute.xlu1 %885 }
 0xe4e   :  { %888 = vst.msk [vmem:[#allocation2 + $0x10] sm:$0xff] %vm80_vm1, %v886_v11  ;;  %3138 = vmatmul.mubr.msk.f32.vlgmr.msra.gmra.mrb[6].mxu1 %vm80_vm1, %v886_v11  ;;  %3149 = vmatmul.mubr.msk.f32.vlgmr.msra.gmra.mrb[8].mxu0 %vm80_vm1, %v886_v11 }
 0xe4f   :  { %3374 = vmatpush3.bf16.msra.mxu1 %v3755_v14  ;;  %3157 = vmatprep.mubr.msk.f32.mxu1 %vm3622_vm0, %v3623_v1 }
 0xe50   :  { %3155 = vmatprep.subr.mxu1 %v3623_v1  ;;  %3377 = vmatpush3.bf16.msra.mxu0 %v3744_v10 }
 0xe51   :  { %3378 = vmatprep.subr.bf16.mxu0 %v3621_v0  ;;  %3168 = vmatprep.mubr.msk.f32.mxu0 %vm3622_vm0, %v3623_v1 }
 0xe53   :  { %3156 = vmatpush3.msk.msra.mxu1 %vm240_vm2, %v3778_v20 }
 0xe54   :  { %3381 = vmatprep.subr.bf16.mxu1 %v3621_v0  ;;  %3380 = vmatpush3.bf16.msra.mxu0 %v3769_v17 }
 0xe55   :  { %3387 = vmatprep.subr.bf16.mxu0 %v3621_v0 }
 0xf21   :  { %v1027_v12 = vpop.f32.mrb[8].mxu0 }
 0xf22   :  { %v1028_v13 = vadd.f32 %v3850_v53, %v1027_v12  ;;  %v3150_v15 = vpop.f32.mrb[9].mxu0 }
 0xf24   :  { %1031 = vst.msk [vmem:[%s4562_s11 + $0x10] sm:$0xff] %vm491_vm5, %v1028_v13  ;;  %v1032_v16 = vsel %vm491_vm5, %v1028_v13, -inf }
 0xf25   :  { %1033 = vmax.xlane.f32.xlu0 %v1032_v16 }
 0xfb2   :  { %v1034_v18 = vpop.xlane.xlu0 %1033 }
 0xfb3   :  { %vm1035_vm13 = vcmp.ge.f32.partialorder %v1028_v13, %v1034_v18 }
 0xfb4   :  { %v1036_v21 = vsel %vm1035_vm13, %v3772_v19, 16 }
 0xfb5   :  { %v1037_v22 = vsel %vm491_vm5, %v1036_v21, 2147483647 }
 0xfb6   :  { %v1039_v23 = vshra.s32 %v1037_v22, 16  ;;  %v1038_v25 = vand.u32 65535, %v1037_v22 }
 0xfb8   :  { %v1041_v24 = vcvt.s32.f32 %v1039_v23  ;;  %v1040_v27 = vcvt.s32.f32 %v1038_v25 }
 0xfba   :  { %1042 = vmin.xlane.f32.xlu1 %v1041_v24 }
0x1047   :  { %v1043_v26 = vpop.xlane.xlu1 %1042 }
0x1048   :  { %vm1044_vm14 = vcmp.eq.f32.partialorder %v1041_v24, %v1043_v26  ;;  %v1049_v30 = vcvt.f32.s32 %v1043_v26 }
0x1049   :  { %v1045_v29 = vsel %vm1044_vm14, %v1040_v27, inf }
0x104a   :  { %1046 = vmin.xlane.f32.xlu0 %v1045_v29  ;;  %v1050_v32 = vshll.u32 %v1049_v30, 16 }
0x10d7   :  { %v1047_v31 = vpop.xlane.xlu0 %1046 }
0x10d8   :  { %v1048_v33 = vcvt.f32.s32 %v1047_v31 }
0x10da   :  { %v1051_v34 = vadd.s32 %v1050_v32, %v1048_v33 }
0x10dc   :  { %1052 = vst.msk [vmem:[%s4561_s10 + $0x10] sm:$0xff] %vm513_vm8, %v1051_v34  ;;  %vm1053_vm15 = vcmp.eq.s32.totalorder %v3772_v19, %v1051_v34 }
0x10dd   :  { %v2869_v35 = vsel %vm1053_vm15, 1.0, %v3623_v1 }
0x10de   :  { %3158 = vmatmul.mubr.msk.f32.vlgmr.msra.gmra.mrb[6].mxu1 %vm236_vm4, %v2869_v35 }
0x10df   :  { %3383 = vmatpush3.bf16.msra.mxu1 %v3818_v46  ;;  %3179 = vmatprep.mubr.msk.f32.mxu1 %vm3622_vm0, %v3623_v1 }
0x10e0   :  { %3384 = vmatprep.subr.bf16.mxu1 %v3621_v0 }
0x10e3   :  { %3386 = vmatpush3.bf16.msra.mxu1 %v3824_v48 }
0x10e4   :  { %3390 = vmatprep.subr.bf16.mxu1 %v3621_v0 }
0x11b1   :  { %v1125_v36 = vpop.f32.mrb[6].mxu1 }
0x11b2   :  { %v3453_v37 = vadd.f32 %v3801_v28, %v1125_v36  ;;  %v3159_v38 = vpop.f32.mrb[7].mxu1 }
0x11b4   :  { %3506 = vtanh.f32 %v3453_v37  ;;  %v2872_v40 = vmul.f32 -1.442695, %v3453_v37 }
0x11b6   :  { %3508 = vpow2.f32 %v2872_v40 }
0x11be   :  { %v3507_v39 = vpop.eup %3506 }
0x11bf   :  { %1138 = vrot.lane.b32.xlu0 %v3507_v39, %s3624_s2 }
0x11c0   :  { %v3509_v41 = vpop.eup %3508 }
0x11c1   :  { %v1132_v42 = vadd.f32 1.0, %v3509_v41 }
0x11c3   :  { %3510 = vrcp.f32 %v1132_v42 }
0x11cd   :  { %v3511_v43 = vpop.eup %3510 }
0x11ce   :  { %v1136_v47 = vmul.f32 %v3511_v43, %v3923_v6 }
0x1231   :  { %v1139_v44 = vpop.permute.xlu0 %1138 }
0x1232   :  { %v1141_v45 = vmul.f32 %v3511_v43, %v1139_v44 }
0x1234   :  { %1143 = vrot.lane.b32.xlu1 %v1141_v45, %s3624_s2 }
0x12a6   :  { %v1144_v49 = vpop.permute.xlu1 %1143 }
0x12a7   :  { %v3969_v50 = vadd.f32 %v1144_v49, %v1136_v47 }
0x12a9   :  { %3512 = vtanh.f32 %v3969_v50 }
0x12b3   :  { %v3513_v51 = vpop.eup %3512 }
0x12b4   :  { %1149 = vrot.lane.b32.xlu1 %v3513_v51, %s3624_s2 }
0x1326   :  { %v1150_v52 = vpop.permute.xlu1 %1149 }
0x1327   :  { %v1152_v54 = vmul.f32 %v3511_v43, %v1150_v52 }
0x1329   :  { %1154 = vrot.lane.b32.xlu0 %v1152_v54, %s3625_s1 }
0x139b   :  { %v1155_v55 = vpop.permute.xlu0 %1154 }
0x139c   :  { %1157 = vst.msk [vmem:[#allocation2 + $0x18] sm:$0xff] %vm80_vm1, %v1155_v55  ;;  %3169 = vmatmul.mubr.msk.f32.vlgmr.msra.gmra.mrb[10].mxu0 %vm80_vm1, %v1155_v55  ;;  %3180 = vmatmul.mubr.msk.f32.vlgmr.msra.gmra.mrb[8].mxu1 %vm80_vm1, %v1155_v55 }
0x139d   :  { %3389 = vmatpush3.bf16.msra.mxu0 %v3755_v14  ;;  %3188 = vmatprep.mubr.msk.f32.mxu0 %vm3622_vm0, %v3623_v1 }
0x139e   :  { %3186 = vmatprep.subr.mxu0 %v3623_v1  ;;  %3392 = vmatpush3.bf16.msra.mxu1 %v3744_v10 }
0x139f   :  { %3393 = vmatprep.subr.bf16.mxu1 %v3621_v0  ;;  %3199 = vmatprep.mubr.msk.f32.mxu1 %vm3622_vm0, %v3623_v1 }
0x13a1   :  { %3187 = vmatpush3.msk.msra.mxu0 %vm240_vm2, %v3778_v20 }
0x13a2   :  { %3396 = vmatprep.subr.bf16.mxu0 %v3621_v0  ;;  %3395 = vmatpush3.bf16.msra.mxu1 %v3769_v17 }
0x13a3   :  { %3402 = vmatprep.subr.bf16.mxu1 %v3621_v0 }
0x146f   :  { %v1296_v56 = vpop.f32.mrb[8].mxu1 }
0x1470   :  { %v1297_v57 = vadd.f32 %v3850_v53, %v1296_v56  ;;  %v3181_v58 = vpop.f32.mrb[9].mxu1 }
0x1472   :  { %1300 = vst.msk [vmem:[%s4562_s11 + $0x18] sm:$0xff] %vm491_vm5, %v1297_v57  ;;  %v1301_v59 = vsel %vm491_vm5, %v1297_v57, -inf }
0x1473   :  { %1302 = vmax.xlane.f32.xlu1 %v1301_v59 }
0x1500   :  { %v1303_v60 = vpop.xlane.xlu1 %1302 }
0x1501   :  { %vm1304_vm3 = vcmp.ge.f32.partialorder %v1297_v57, %v1303_v60 }
0x1502   :  { %v1305_v61 = vsel %vm1304_vm3, %v3772_v19, 16 }
0x1503   :  { %v1306_v62 = vsel %vm491_vm5, %v1305_v61, 2147483647 }
0x1504   :  { %v1308_v63 = vshra.s32 %v1306_v62, 16  ;;  %v1307_v3 = vand.u32 65535, %v1306_v62 }
0x1506   :  { %v1310_v2 = vcvt.s32.f32 %v1308_v63  ;;  %v1309_v5 = vcvt.s32.f32 %v1307_v3 }
0x1508   :  { %1311 = vmin.xlane.f32.xlu0 %v1310_v2 }
0x1595   :  { %v1312_v4 = vpop.xlane.xlu0 %1311 }
0x1596   :  { %vm1313_vm6 = vcmp.eq.f32.partialorder %v1310_v2, %v1312_v4  ;;  %v1318_v7 = vcvt.f32.s32 %v1312_v4 }
0x1597   :  { %v1314_v6 = vsel %vm1313_vm6, %v1309_v5, inf }
0x1598   :  { %1315 = vmin.xlane.f32.xlu0 %v1314_v6  ;;  %v1319_v9 = vshll.u32 %v1318_v7, 16 }
0x1625   :  { %v1316_v8 = vpop.xlane.xlu0 %1315 }
0x1626   :  { %v1317_v11 = vcvt.f32.s32 %v1316_v8 }
0x1628   :  { %v1320_v12 = vadd.s32 %v1319_v9, %v1317_v11 }
0x162a   :  { %1321 = vst.msk [vmem:[%s4561_s10 + $0x18] sm:$0xff] %vm513_vm8, %v1320_v12  ;;  %vm1322_vm7 = vcmp.eq.s32.totalorder %v3772_v19, %v1320_v12 }
0x162b   :  { %v2875_v13 = vsel %vm1322_vm7, 1.0, %v3623_v1 }
0x162c   :  { %3189 = vmatmul.mubr.msk.f32.vlgmr.msra.gmra.mrb[10].mxu0 %vm236_vm4, %v2875_v13 }
0x162d   :  { %3398 = vmatpush3.bf16.msra.mxu0 %v3818_v46  ;;  %3210 = vmatprep.mubr.msk.f32.mxu0 %vm3622_vm0, %v3623_v1 }
0x162e   :  { %3399 = vmatprep.subr.bf16.mxu0 %v3621_v0 }
0x1631   :  { %3401 = vmatpush3.bf16.msra.mxu0 %v3824_v48 }
0x1632   :  { %3405 = vmatprep.subr.bf16.mxu0 %v3621_v0 }
0x16ff   :  { %v1394_v15 = vpop.f32.mrb[10].mxu0 }
0x1700   :  { %v3454_v16 = vadd.f32 %v3801_v28, %v1394_v15  ;;  %v3190_v18 = vpop.f32.mrb[11].mxu0 }
0x1702   :  { %3514 = vtanh.f32 %v3454_v16  ;;  %v2878_v22 = vmul.f32 -1.442695, %v3454_v16 }
0x1704   :  { %3516 = vpow2.f32 %v2878_v22 }
0x170c   :  { %v3515_v21 = vpop.eup %3514 }
0x170d   :  { %1407 = vrot.lane.b32.xlu1 %v3515_v21, %s3624_s2 }
0x170e   :  { %v3517_v23 = vpop.eup %3516 }
0x170f   :  { %v1401_v24 = vadd.f32 1.0, %v3517_v23 }
0x1711   :  { %3518 = vrcp.f32 %v1401_v24 }
0x171b   :  { %v3519_v25 = vpop.eup %3518 }
0x171c   :  { %v1405_v29 = vmul.f32 %v3519_v25, %v3969_v50 }
0x177f   :  { %v1408_v26 = vpop.permute.xlu1 %1407 }
0x1780   :  { %v1410_v27 = vmul.f32 %v3519_v25, %v1408_v26 }
0x1782   :  { %1412 = vrot.lane.b32.xlu0 %v1410_v27, %s3624_s2 }
0x17f4   :  { %v1413_v30 = vpop.permute.xlu0 %1412 }
0x17f5   :  { %v4015_v31 = vadd.f32 %v1413_v30, %v1405_v29 }
0x17f7   :  { %3520 = vtanh.f32 %v4015_v31 }
0x1801   :  { %v3521_v32 = vpop.eup %3520 }
0x1802   :  { %1418 = vrot.lane.b32.xlu1 %v3521_v32, %s3624_s2 }
0x1874   :  { %v1419_v33 = vpop.permute.xlu1 %1418 }
0x1875   :  { %v1421_v34 = vmul.f32 %v3519_v25, %v1419_v33 }
0x1877   :  { %1423 = vrot.lane.b32.xlu1 %v1421_v34, %s3625_s1 }
0x18e9   :  { %v1424_v35 = vpop.permute.xlu1 %1423 }
0x18ea   :  { %1426 = vst.msk [vmem:[#allocation2 + $0x20] sm:$0xff] %vm80_vm1, %v1424_v35  ;;  %3200 = vmatmul.mubr.msk.f32.vlgmr.msra.gmra.mrb[10].mxu1 %vm80_vm1, %v1424_v35  ;;  %3211 = vmatmul.mubr.msk.f32.vlgmr.msra.gmra.mrb[12].mxu0 %vm80_vm1, %v1424_v35 }
0x18eb   :  { %3404 = vmatpush3.bf16.msra.mxu1 %v3755_v14  ;;  %3219 = vmatprep.mubr.msk.f32.mxu1 %vm3622_vm0, %v3623_v1 }
0x18ec   :  { %3217 = vmatprep.subr.mxu1 %v3623_v1  ;;  %3407 = vmatpush3.bf16.msra.mxu0 %v3744_v10 }
0x18ed   :  { %3408 = vmatprep.subr.bf16.mxu0 %v3621_v0  ;;  %3230 = vmatprep.mubr.msk.f32.mxu0 %vm3622_vm0, %v3623_v1 }
0x18ef   :  { %3218 = vmatpush3.msk.msra.mxu1 %vm240_vm2, %v3778_v20 }
0x18f0   :  { %3411 = vmatprep.subr.bf16.mxu1 %v3621_v0  ;;  %3410 = vmatpush3.bf16.msra.mxu0 %v3769_v17 }
0x18f1   :  { %3417 = vmatprep.subr.bf16.mxu0 %v3621_v0 }
0x19bd   :  { %v1565_v36 = vpop.f32.mrb[12].mxu0 }
0x19be   :  { %v1566_v37 = vadd.f32 %v3850_v53, %v1565_v36  ;;  %v3212_v38 = vpop.f32.mrb[13].mxu0 }
0x19c0   :  { %1569 = vst.msk [vmem:[%s4562_s11 + $0x20] sm:$0xff] %vm491_vm5, %v1566_v37  ;;  %v1570_v39 = vsel %vm491_vm5, %v1566_v37, -inf }
0x19c1   :  { %1571 = vmax.xlane.f32.xlu0 %v1570_v39 }
0x1a4e   :  { %v1572_v40 = vpop.xlane.xlu0 %1571 }
0x1a4f   :  { %vm1573_vm9 = vcmp.ge.f32.partialorder %v1566_v37, %v1572_v40 }
0x1a50   :  { %v1574_v41 = vsel %vm1573_vm9, %v3772_v19, 16 }
0x1a51   :  { %v1575_v42 = vsel %vm491_vm5, %v1574_v41, 2147483647 }
0x1a52   :  { %v1577_v43 = vshra.s32 %v1575_v42, 16  ;;  %v1576_v45 = vand.u32 65535, %v1575_v42 }
0x1a54   :  { %v1579_v44 = vcvt.s32.f32 %v1577_v43  ;;  %v1578_v49 = vcvt.s32.f32 %v1576_v45 }
0x1a56   :  { %1580 = vmin.xlane.f32.xlu1 %v1579_v44 }
0x1ae3   :  { %v1581_v47 = vpop.xlane.xlu1 %1580 }
0x1ae4   :  { %vm1582_vm10 = vcmp.eq.f32.partialorder %v1579_v44, %v1581_v47  ;;  %v1587_v51 = vcvt.f32.s32 %v1581_v47 }
0x1ae5   :  { %v1583_v50 = vsel %vm1582_vm10, %v1578_v49, inf }
0x1ae6   :  { %1584 = vmin.xlane.f32.xlu0 %v1583_v50  ;;  %v1588_v54 = vshll.u32 %v1587_v51, 16 }
0x1b73   :  { %v1585_v52 = vpop.xlane.xlu0 %1584 }
0x1b74   :  { %v1586_v55 = vcvt.f32.s32 %v1585_v52 }
0x1b76   :  { %v1589_v56 = vadd.s32 %v1588_v54, %v1586_v55 }
0x1b78   :  { %1590 = vst.msk [vmem:[%s4561_s10 + $0x20] sm:$0xff] %vm513_vm8, %v1589_v56  ;;  %vm1591_vm11 = vcmp.eq.s32.totalorder %v3772_v19, %v1589_v56 }
0x1b79   :  { %v2881_v57 = vsel %vm1591_vm11, 1.0, %v3623_v1 }
0x1b7a   :  { %3220 = vmatmul.mubr.msk.f32.vlgmr.msra.gmra.mrb[10].mxu1 %vm236_vm4, %v2881_v57 }
0x1b7b   :  { %3413 = vmatpush3.bf16.msra.mxu1 %v3818_v46  ;;  %3241 = vmatprep.mubr.msk.f32.mxu1 %vm3622_vm0, %v3623_v1 }
0x1b7c   :  { %3414 = vmatprep.subr.bf16.mxu1 %v3621_v0 }
0x1b7f   :  { %3416 = vmatpush3.bf16.msra.mxu1 %v3824_v48 }
0x1b80   :  { %3420 = vmatprep.subr.bf16.mxu1 %v3621_v0 }
0x1c4d   :  { %v1663_v58 = vpop.f32.mrb[10].mxu1 }
0x1c4e   :  { %v3455_v59 = vadd.f32 %v3801_v28, %v1663_v58  ;;  %v3221_v60 = vpop.f32.mrb[11].mxu1 }
0x1c50   :  { %3522 = vtanh.f32 %v3455_v59  ;;  %v2884_v62 = vmul.f32 -1.442695, %v3455_v59 }
0x1c52   :  { %3524 = vpow2.f32 %v2884_v62  ;;  %v2336_v62 = vld [vmem:[%s4559_s8] sm:$0xff] }
0x1c5a   :  { %v3523_v61 = vpop.eup %3522 }
0x1c5b   :  { %1676 = vrot.lane.b32.xlu0 %v3523_v61, %s3624_s2 }
0x1c5c   :  { %v3525_v63 = vpop.eup %3524 }
0x1c5d   :  { %v1670_v2 = vadd.f32 1.0, %v3525_v63  ;;  %v2337_v63 = vld [vmem:[%s4559_s8 + $0x8] sm:$0xff] }
0x1c5f   :  { %3526 = vrcp.f32 %v1670_v2  ;;  %v3441_v2 = vpack.c.bf16 %v2337_v63, %v2336_v62 }
0x1c69   :  { %v3527_v3 = vpop.eup %3526 }
0x1c6a   :  { %v1674_v6 = vmul.f32 %v3527_v3, %v4015_v31 }
0x1ccd   :  { %v1677_v4 = vpop.permute.xlu0 %1676 }
0x1cce   :  { %v1679_v5 = vmul.f32 %v3527_v3, %v1677_v4 }
0x1cd0   :  { %1681 = vrot.lane.b32.xlu1 %v1679_v5, %s3624_s2 }
0x1d42   :  { %v1682_v7 = vpop.permute.xlu1 %1681 }
0x1d43   :  { %v4061_v8 = vadd.f32 %v1682_v7, %v1674_v6  ;;  %v2338_v7 = vld [vmem:[%s4559_s8 + $0x10] sm:$0xff] }
0x1d45   :  { %3528 = vtanh.f32 %v4061_v8 }
0x1d4f   :  { %v3529_v9 = vpop.eup %3528 }
0x1d50   :  { %1687 = vrot.lane.b32.xlu1 %v3529_v9, %s3624_s2 }
0x1dc2   :  { %v1688_v11 = vpop.permute.xlu1 %1687 }
0x1dc3   :  { %v1690_v12 = vmul.f32 %v3527_v3, %v1688_v11 }
0x1dc5   :  { %1692 = vrot.lane.b32.xlu0 %v1690_v12, %s3625_s1 }
0x1e37   :  { %v1693_v13 = vpop.permute.xlu0 %1692 }
0x1e38   :  { %1695 = vst.msk [vmem:[#allocation2 + $0x28] sm:$0xff] %vm80_vm1, %v1693_v13  ;;  %3231 = vmatmul.mubr.msk.f32.vlgmr.msra.gmra.mrb[14].mxu0 %vm80_vm1, %v1693_v13  ;;  %3242 = vmatmul.mubr.msk.f32.vlgmr.msra.gmra.mrb[12].mxu1 %vm80_vm1, %v1693_v13  ;;  %v2328_v13 = vld [vmem:[#allocation2] sm:$0xff] }
0x1e39   :  { %3419 = vmatpush3.bf16.msra.mxu0 %v3755_v14  ;;  %3250 = vmatprep.mubr.msk.f32.mxu0 %vm3622_vm0, %v3623_v1 }
0x1e3a   :  { %3248 = vmatprep.subr.mxu0 %v3623_v1  ;;  %3422 = vmatpush3.bf16.msra.mxu1 %v3744_v10 }
0x1e3b   :  { %3423 = vmatprep.subr.bf16.mxu1 %v3621_v0  ;;  %3261 = vmatprep.mubr.msk.f32.mxu1 %vm3622_vm0, %v3623_v1 }
0x1e3d   :  { %3249 = vmatpush3.msk.msra.mxu0 %vm240_vm2, %v3778_v20 }
0x1e3e   :  { %3426 = vmatprep.subr.bf16.mxu0 %v3621_v0  ;;  %3425 = vmatpush3.bf16.msra.mxu1 %v3769_v17 }
0x1e3f   :  { %3432 = vmatprep.subr.bf16.mxu1 %v3621_v0 }
0x1f0b   :  { %v1834_v15 = vpop.f32.mrb[12].mxu1 }
0x1f0c   :  { %v1835_v16 = vadd.f32 %v3850_v53, %v1834_v15  ;;  %v3243_v18 = vpop.f32.mrb[13].mxu1  ;;  %v2329_v15 = vld [vmem:[#allocation2 + $0x8] sm:$0xff] }
0x1f0d   :  { %v2331_v18 = vld [vmem:[#allocation2 + $0x18] sm:$0xff] }
0x1f0e   :  { %1838 = vst.msk [vmem:[%s4562_s11 + $0x28] sm:$0xff] %vm491_vm5, %v1835_v16  ;;  %v1839_v10 = vsel %vm491_vm5, %v1835_v16, -inf }
0x1f0f   :  { %1840 = vmax.xlane.f32.xlu1 %v1839_v10  ;;  %v2332_v10 = vld [vmem:[#allocation2 + $0x20] sm:$0xff] }
0x1f9c   :  { %v1841_v21 = vpop.xlane.xlu1 %1840 }
0x1f9d   :  { %vm1842_vm12 = vcmp.ge.f32.partialorder %v1835_v16, %v1841_v21  ;;  %v2330_v16 = vld [vmem:[#allocation2 + $0x10] sm:$0xff] }
0x1f9e   :  { %v1843_v22 = vsel %vm1842_vm12, %v3772_v19, 16 }
0x1f9f   :  { %v1844_v17 = vsel %vm491_vm5, %v1843_v22, 2147483647 }
0x1fa0   :  { %v1846_v23 = vshra.s32 %v1844_v17, 16  ;;  %v1845_v25 = vand.u32 65535, %v1844_v17  ;;  %v3594_v17 = vld [vmem:[%s4556_s5] ss:$0 sm:$0xff]  ;;  %s3626_s5 = smov 126  }
0x1fa2   :  { %v1848_v24 = vcvt.s32.f32 %v1846_v23  ;;  %v1847_v27 = vcvt.s32.f32 %v1845_v25  ;;  %v4166_v25 = vld [vmem:[%s4560_s9] ss:$0 sm:$0xff] }
0x1fa4   :  { %1849 = vmin.xlane.f32.xlu0 %v1848_v24 }
0x2031   :  { %v1850_v26 = vpop.xlane.xlu0 %1849 }
0x2032   :  { %vm1851_vm13 = vcmp.eq.f32.partialorder %v1848_v24, %v1850_v26  ;;  %v1856_v30 = vcvt.f32.s32 %v1850_v26 }
0x2033   :  { %v1852_v29 = vsel %vm1851_vm13, %v1847_v27, inf }
0x2034   :  { %1853 = vmin.xlane.f32.xlu0 %v1852_v29  ;;  %v1857_v32 = vshll.u32 %v1856_v30, 16 }
0x20c1   :  { %v1854_v31 = vpop.xlane.xlu0 %1853 }
0x20c2   :  { %v1855_v33 = vcvt.f32.s32 %v1854_v31 }
0x20c4   :  { %v1858_v34 = vadd.s32 %v1857_v32, %v1855_v33 }
0x20c6   :  { %1859 = vst.msk [vmem:[%s4561_s10 + $0x28] sm:$0xff] %vm513_vm8, %v1858_v34  ;;  %vm1860_vm14 = vcmp.eq.s32.totalorder %v3772_v19, %v1858_v34 }
0x20c7   :  { %v2887_v35 = vsel %vm1860_vm14, 1.0, %v3623_v1 }
0x20c8   :  { %3251 = vmatmul.mubr.msk.f32.vlgmr.msra.gmra.mrb[14].mxu0 %vm236_vm4, %v2887_v35 }
0x20c9   :  { %3428 = vmatpush3.bf16.msra.mxu0 %v3818_v46  ;;  %3272 = vmatprep.mubr.msk.f32.mxu0 %vm3622_vm0, %v3623_v1 }
0x20ca   :  { %3429 = vmatprep.subr.bf16.mxu0 %v3621_v0 }
0x20cd   :  { %3431 = vmatpush3.bf16.msra.mxu0 %v3824_v48 }
0x20ce   :  { %3435 = vmatprep.subr.bf16.mxu0 %v3621_v0 }
0x219b   :  { %v1932_v36 = vpop.f32.mrb[14].mxu0 }
0x219c   :  { %v3456_v37 = vadd.f32 %v3801_v28, %v1932_v36  ;;  %v3252_v38 = vpop.f32.mrb[15].mxu0 }
0x219e   :  { %3530 = vtanh.f32 %v3456_v37  ;;  %v2890_v40 = vmul.f32 -1.442695, %v3456_v37 }
0x21a0   :  { %3532 = vpow2.f32 %v2890_v40 }
0x21a8   :  { %v3531_v39 = vpop.eup %3530 }
0x21a9   :  { %1945 = vrot.lane.b32.xlu1 %v3531_v39, %s3624_s2 }
0x21aa   :  { %v3533_v41 = vpop.eup %3532 }
0x21ab   :  { %v1939_v42 = vadd.f32 1.0, %v3533_v41 }
0x21ad   :  { %3534 = vrcp.f32 %v1939_v42 }
0x21b7   :  { %v3535_v43 = vpop.eup %3534 }
0x21b8   :  { %v1943_v47 = vmul.f32 %v3535_v43, %v4061_v8  ;;  %v2339_v8 = vld [vmem:[%s4559_s8 + $0x18] sm:$0xff] }
0x21b9   :  { %v3445_v11 = vpack.c.bf16 %v2339_v8, %v2338_v7 }
0x221b   :  { %v1946_v44 = vpop.permute.xlu1 %1945 }
0x221c   :  { %v1948_v45 = vmul.f32 %v3535_v43, %v1946_v44 }
0x221e   :  { %1950 = vrot.lane.b32.xlu0 %v1948_v45, %s3624_s2 }
0x2290   :  { %v1951_v49 = vpop.permute.xlu0 %1950 }
0x2291   :  { %v4107_v50 = vadd.f32 %v1951_v49, %v1943_v47 }
0x2293   :  { %3536 = vtanh.f32 %v4107_v50 }
0x229d   :  { %v3537_v28 = vpop.eup %3536 }
0x229e   :  { %1956 = vrot.lane.b32.xlu1 %v3537_v28, %s3624_s2 }
0x2310   :  { %v1957_v51 = vpop.permute.xlu1 %1956 }
0x2311   :  { %v1959_v52 = vmul.f32 %v3535_v43, %v1957_v51 }
0x2313   :  { %1961 = vrot.lane.b32.xlu1 %v1959_v52, %s3625_s1  ;;  %v4223_v52 = vld [vmem:[%s4562_s11 + $0x8] sm:$0xff] }
0x2385   :  { %v1962_v54 = vpop.permute.xlu1 %1961 }
0x2386   :  { %1964 = vst.msk [vmem:[#allocation2 + $0x30] sm:$0xff] %vm80_vm1, %v1962_v54  ;;  %3262 = vmatmul.mubr.msk.f32.vlgmr.msra.gmra.mrb[14].mxu1 %vm80_vm1, %v1962_v54  ;;  %3273 = vmatmul.mubr.msk.f32.vlgmr.msra.gmra.mrb[16].mxu0 %vm80_vm1, %v1962_v54  ;;  %v2640_v54 = vsel %vm491_vm5, %v4223_v52, -inf }
0x2387   :  { %3434 = vmatpush3.bf16.msra.mxu1 %v3755_v14  ;;  %3281 = vmatprep.mubr.msk.f32.mxu1 %vm3622_vm0, %v3623_v1 }
0x2388   :  { %3279 = vmatprep.subr.mxu1 %v3623_v1  ;;  %3437 = vmatpush3.bf16.msra.mxu0 %v3818_v46 }
0x2389   :  { %3438 = vmatprep.subr.bf16.mxu0 %v3621_v0  ;;  %3292 = vmatprep.mubr.msk.f32.mxu0 %vm3622_vm0, %v3623_v1 }
0x238b   :  { %3280 = vmatpush3.msk.msra.mxu1 %vm240_vm2, %v3778_v20 }
0x238c   :  { %3440 = vmatpush3.bf16.msra.mxu0 %v3824_v48  ;;  %3442 = vmatprep.subr.bf16.mxu1 %v3441_v2 }
0x238d   :  { %v2334_v21 = vld [vmem:[#allocation2 + $0x30] sm:$0xff] }
0x2459   :  { %v2103_v55 = vpop.f32.mrb[16].mxu0 }
0x245a   :  { %v2104_v14 = vadd.f32 %v3850_v53, %v2103_v55  ;;  %v3274_v56 = vpop.f32.mrb[17].mxu0  ;;  %v4230_v55 = vld [vmem:[%s4562_s11 + $0x10] sm:$0xff] }
0x245c   :  { %2107 = vst.msk [vmem:[%s4562_s11 + $0x30] sm:$0xff] %vm491_vm5, %v2104_v14  ;;  %v2108_v46 = vsel %vm491_vm5, %v2104_v14, -inf }
0x245d   :  { %2109 = vmax.xlane.f32.xlu0 %v2108_v46  ;;  %v4244_v46 = vld [vmem:[%s4562_s11 + $0x20] sm:$0xff] }
0x24ea   :  { %v2110_v0 = vpop.xlane.xlu0 %2109 }
0x24eb   :  { %vm2111_vm15 = vcmp.ge.f32.partialorder %v2104_v14, %v2110_v0  ;;  %v4237_v14 = vld [vmem:[%s4562_s11 + $0x18] sm:$0xff]  ;;  %v2649_v0 = vsel %vm491_vm5, %v4244_v46, -inf }
0x24ec   :  { %v2112_v57 = vsel %vm2111_vm15, %v3772_v19, 16  ;;  %v2646_v56 = vsel %vm491_vm5, %v4237_v14, -inf }
0x24ed   :  { %v2113_v20 = vsel %vm491_vm5, %v2112_v57, 2147483647  ;;  %v4251_v57 = vld [vmem:[%s4562_s11 + $0x28] sm:$0xff] }
0x24ee   :  { %v2115_v58 = vshra.s32 %v2113_v20, 16  ;;  %v2114_v59 = vand.u32 65535, %v2113_v20  ;;  %v2652_v20 = vsel %vm491_vm5, %v4251_v57, -inf }
0x24f0   :  { %v2117_v48 = vcvt.s32.f32 %v2115_v58  ;;  %v2116_v60 = vcvt.s32.f32 %v2114_v59  ;;  %v4258_v58 = vld [vmem:[%s4562_s11 + $0x30] sm:$0xff] }
0x24f2   :  { %2118 = vmin.xlane.f32.xlu1 %v2117_v48 }
0x257f   :  { %v2119_v53 = vpop.xlane.xlu1 %2118 }
0x2580   :  { %vm2120_vm0 = vcmp.eq.f32.partialorder %v2117_v48, %v2119_v53  ;;  %v2125_v3 = vcvt.f32.s32 %v2119_v53  ;;  %v2655_v48 = vsel %vm491_vm5, %v4258_v58, -inf }
0x2581   :  { %v2121_v61 = vsel %vm2120_vm0, %v2116_v60, inf  ;;  %v3627_v60 = vmov 1  }
0x2582   :  { %2122 = vmin.xlane.f32.xlu0 %v2121_v61  ;;  %v2126_v5 = vshll.u32 %v2125_v3, 16  ;;  %3481 = vset.pattern.permute.xlu1 %v3627_v60  ;;  %v4278_v61 = vld [vmem:[%s4562_s11] sm:$0xff] }
0x2583   :  { %3480 = vset.pattern.permute.xlu0 %v3627_v60  ;;  %v2637_v62 = vsel %vm491_vm5, %v4278_v61, -inf }
0x260f   :  { %v2123_v4 = vpop.xlane.xlu0 %2122 }
0x2610   :  { %v2124_v6 = vcvt.f32.s32 %v2123_v4 }
0x2612   :  { %v2127_v9 = vadd.s32 %v2126_v5, %v2124_v6 }
0x2614   :  { %2128 = vst.msk [vmem:[%s4561_s10 + $0x30] sm:$0xff] %vm513_vm8, %v2127_v9  ;;  %vm2129_vm2 = vcmp.eq.s32.totalorder %v3772_v19, %v2127_v9 }
0x2615   :  { %v2893_v12 = vsel %vm2129_vm2, 1.0, %v3623_v1  ;;  %v2333_v1 = vld [vmem:[#allocation2 + $0x28] sm:$0xff] }
0x2616   :  { %3282 = vmatmul.mubr.msk.f32.vlgmr.msra.gmra.mrb[14].mxu1 %vm236_vm4, %v2893_v12 }
0x2617   :  { %3444 = vmatpush3.bf16.msra.mxu1 %v3441_v2  ;;  %3303 = vmatprep.mubr.msk.f32.mxu1 %vm80_vm1, %v2328_v13 }
0x2618   :  { %3446 = vmatprep.subr.bf16.mxu1 %v3445_v11 }
0x261b   :  { %3448 = vmatpush3.bf16.msra.mxu1 %v3445_v11 }
0x261e   :  { %3304 = vmatmul.mubr.msk.f32.vlgmr.msra.gmra.mrb[16].mxu1 %vm80_vm1, %v2329_v15 }
0x261f   :  { %3306 = vmatprep.mubr.msk.f32.mxu1 %vm80_vm1, %v2330_v16 }
0x2622   :  { %3307 = vmatmul.mubr.msk.f32.gmra.mrb[18].mxu1 %vm80_vm1, %v2331_v18 }
0x2623   :  { %3309 = vmatprep.mubr.msk.f32.mxu1 %vm80_vm1, %v2332_v10 }
0x2626   :  { %3310 = vmatmul.mubr.msk.f32.gmra.mrb[20].mxu1 %vm80_vm1, %v2333_v1 }
0x2627   :  { %3312 = vmatprep.mubr.msk.f32.mxu1 %vm80_vm1, %v2334_v21 }
0x26e9   :  { %v2201_v22 = vpop.f32.mrb[14].mxu1 }
0x26ea   :  { %v3457_v23 = vadd.f32 %v3594_v17, %v2201_v22  ;;  %v3283_v24 = vpop.f32.mrb[15].mxu1 }
0x26ec   :  { %3538 = vtanh.f32 %v3457_v23  ;;  %v2896_v40 = vmul.f32 -1.442695, %v3457_v23 }
0x26ee   :  { %3540 = vpow2.f32 %v2896_v40 }
0x26f1   :  { %v3305_v26 = vpop.f32.mrb[16].mxu1 }
0x26f2   :  { %v4169_v27 = vadd.f32 %v3305_v26, %v4166_v25  ;;  %v2437_v29 = vpop.f32.mrb[17].mxu1 }
0x26f3   :  { %v4172_v30 = vadd.f32 %v4166_v25, %v2437_v29 }
0x26f4   :  { %2814 = vst.msk [vmem:[%s4566_s15 + $0x8] sm:$0xff] %vm513_vm8, %v4169_v27 }
0x26f5   :  { %2813 = vst.msk [vmem:[%s4566_s15] sm:$0xff] %vm513_vm8, %v4172_v30  ;;  %v3308_v31 = vpop.f32.mrb[18].mxu1 }
0x26f6   :  { %v3539_v32 = vpop.eup %3538  ;;  %v4185_v33 = vadd.f32 %v3308_v31, %v4166_v25  ;;  %v2447_v34 = vpop.f32.mrb[19].mxu1 }
0x26f7   :  { %v4188_v35 = vadd.f32 %v4166_v25, %v2447_v34  ;;  %2214 = vrot.lane.b32.xlu0 %v3539_v32, %s3624_s2 }
0x26f8   :  { %2816 = vst.msk [vmem:[%s4566_s15 + $0x18] sm:$0xff] %vm513_vm8, %v4185_v33  ;;  %v3541_v41 = vpop.eup %3540 }
0x26f9   :  { %2815 = vst.msk [vmem:[%s4566_s15 + $0x10] sm:$0xff] %vm513_vm8, %v4188_v35  ;;  %v3311_v36 = vpop.f32.mrb[20].mxu1  ;;  %v2208_v42 = vadd.f32 1.0, %v3541_v41 }
0x26fa   :  { %v4202_v37 = vadd.f32 %v3311_v36, %v4166_v25  ;;  %v2457_v38 = vpop.f32.mrb[21].mxu1 }
0x26fb   :  { %v4205_v39 = vadd.f32 %v4166_v25, %v2457_v38  ;;  %3542 = vrcp.f32 %v2208_v42 }
0x26fc   :  { %2818 = vst.msk [vmem:[%s4566_s15 + $0x28] sm:$0xff] %vm513_vm8, %v4202_v37 }
0x26fd   :  { %2817 = vst.msk [vmem:[%s4566_s15 + $0x20] sm:$0xff] %vm513_vm8, %v4205_v39 }
0x2705   :  { %v3543_v43 = vpop.eup %3542 }
0x2706   :  { %v2212_v47 = vmul.f32 %v3543_v43, %v4107_v50  ;;  %v2643_v50 = vsel %vm491_vm5, %v4230_v55, -inf }
0x2769   :  { %v2215_v44 = vpop.permute.xlu0 %2214 }
0x276a   :  { %v2217_v45 = vmul.f32 %v3543_v43, %v2215_v44 }
0x276c   :  { %2219 = vrot.lane.b32.xlu1 %v2217_v45, %s3624_s2 }
0x27de   :  { %v2220_v49 = vpop.permute.xlu1 %2219 }
0x27df   :  { %v2222_v28 = vadd.f32 %v2220_v49, %v2212_v47 }
0x27e1   :  { %3544 = vtanh.f32 %v2222_v28 }
0x27eb   :  { %v3545_v51 = vpop.eup %3544 }
0x27ec   :  { %2225 = vrot.lane.b32.xlu1 %v3545_v51, %s3624_s2 }
0x2810   :  { %2641 = vmax.xlane.f32.xlu1 %v2640_v54 }
0x2814   :  { %2644 = vmax.xlane.f32.xlu1 %v2643_v50 }
0x2818   :  { %2647 = vmax.xlane.f32.xlu1 %v2646_v56 }
0x281c   :  { %2650 = vmax.xlane.f32.xlu1 %v2649_v0 }
0x2820   :  { %2653 = vmax.xlane.f32.xlu1 %v2652_v20 }
0x2824   :  { %2656 = vmax.xlane.f32.xlu1 %v2655_v48 }
0x285e   :  { %v2226_v59 = vpop.permute.xlu1 %2225 }
0x285f   :  { %v2228_v53 = vmul.f32 %v3543_v43, %v2226_v59 }
0x2861   :  { %2230 = vrot.lane.b32.xlu0 %v2228_v53, %s3625_s1 }
0x2865   :  { %2524 = vrot.lane.b32.xlu0 %v4172_v30, %s3626_s5 }
0x2869   :  { %2526 = vrot.lane.b32.xlu0 %v4169_v27, %s3626_s5 }
0x286d   :  { %2528 = vrot.lane.b32.xlu0 %v4188_v35, %s3626_s5 }
0x2871   :  { %2530 = vrot.lane.b32.xlu0 %v4185_v33, %s3626_s5 }
0x2875   :  { %2532 = vrot.lane.b32.xlu0 %v4205_v39, %s3626_s5 }
0x2879   :  { %2534 = vrot.lane.b32.xlu0 %v4202_v37, %s3626_s5 }
0x2898   :  { %2638 = vmax.xlane.f32.xlu0 %v2637_v62 }
0x289d   :  { %v4291_v18 = vpop.xlane.xlu1 %2641 }
0x289e   :  { %v2662_v22 = vsub.f32 %v4223_v52, %v4291_v18 }
0x28a0   :  { %v2671_v23 = vmul.f32 1.442695, %v2662_v22 }
0x28a1   :  { %v4293_v10 = vpop.xlane.xlu1 %2644 }
0x28a2   :  { %v2663_v24 = vsub.f32 %v4230_v55, %v4293_v10  ;;  %3546 = vpow2.f32 %v2671_v23 }
0x28a4   :  { %v2673_v26 = vmul.f32 1.442695, %v2663_v24 }
0x28a5   :  { %v4295_v1 = vpop.xlane.xlu1 %2647 }
0x28a6   :  { %3548 = vpow2.f32 %v2673_v26  ;;  %v2664_v36 = vsub.f32 %v4237_v14, %v4295_v1 }
0x28a8   :  { %v2675_v41 = vmul.f32 1.442695, %v2664_v36 }
0x28a9   :  { %v4298_v21 = vpop.xlane.xlu1 %2650 }
0x28aa   :  { %v2665_v29 = vsub.f32 %v4244_v46, %v4298_v21 }
0x28ac   :  { %v2677_v32 = vmul.f32 1.442695, %v2665_v29  ;;  %v3547_v40 = vpop.eup %3546 }
0x28ad   :  { %v4302_v17 = vpop.xlane.xlu1 %2653  ;;  %v2688_v42 = vsel %vm491_vm5, %v3547_v40, 0.0  ;;  %v2750_v0 = vmul.f32 %v3547_v40, %v4223_v52 }
0x28ae   :  { %3550 = vpow2.f32 %v2677_v32  ;;  %v2666_v54 = vsub.f32 %v4251_v57, %v4302_v17 }
0x28af   :  { %v2760_v59 = vsel %vm491_vm5, %v2750_v0, 0.0 }
0x28b0   :  { %v3549_v43 = vpop.eup %3548  ;;  %v2679_v48 = vmul.f32 1.442695, %v2666_v54 }
0x28b1   :  { %v4308_v31 = vpop.xlane.xlu1 %2656  ;;  %v2691_v44 = vsel %vm491_vm5, %v3549_v43, 0.0 }
0x28b2   :  { %v2667_v34 = vsub.f32 %v4258_v58, %v4308_v31 }
0x28b4   :  { %v2681_v38 = vmul.f32 1.442695, %v2667_v34 }
0x28b6   :  { %3552 = vpow2.f32 %v2681_v38 }
0x28b7   :  { %3554 = vpow2.f32 %v2675_v41 }
0x28b8   :  { %v3551_v45 = vpop.eup %3550 }
0x28b9   :  { %v2697_v49 = vsel %vm491_vm5, %v3551_v45, 0.0 }
0x28c0   :  { %v3553_v28 = vpop.eup %3552 }
0x28c1   :  { %v2703_v56 = vsel %vm491_vm5, %v3553_v28, 0.0  ;;  %v3555_v20 = vpop.eup %3554  ;;  %v2755_v22 = vmul.f32 %v3553_v28, %v4258_v58 }
0x28c2   :  { %v2752_v53 = vmul.f32 %v3555_v20, %v4237_v14 }
0x28c3   :  { %v2775_v24 = vsel %vm491_vm5, %v2755_v22, 0.0 }
0x28c4   :  { %v2766_v60 = vsel %vm491_vm5, %v2752_v53, 0.0 }
0x28d3   :  { %v2231_v63 = vpop.permute.xlu0 %2230 }
0x28d4   :  { %2233 = vst.msk [vmem:[#allocation2 + $0x38] sm:$0xff] %vm80_vm1, %v2231_v63  ;;  %3293 = vmatmul.mubr.msk.f32.vlgmr.msra.gmra.mrb[18].mxu0 %vm80_vm1, %v2231_v63 }
0x28d7   :  { %v2525_v2 = vpop.permute.xlu0 %2524 }
0x28d8   :  { %v2548_v3 = vsel %vm491_vm5, %v2525_v2, 0.0  ;;  %v2694_v2 = vsel %vm491_vm5, %v3555_v20, 0.0 }
0x28d9   :  { %2549 = vadd.xlane.f32.xlu0 %v2548_v3 }
0x28db   :  { %v2527_v4 = vpop.permute.xlu0 %2526  ;;  %v2335_v5 = vld [vmem:[#allocation2 + $0x38] sm:$0xff] }
0x28dc   :  { %3313 = vmatmul.mubr.msk.f32.gmra.mrb[22].mxu1 %vm80_vm1, %v2335_v5  ;;  %v2551_v6 = vsel %vm491_vm5, %v2527_v4, 0.0  ;;  %v2751_v5 = vmul.f32 %v3549_v43, %v4230_v55  ;;  %v3595_v55 = vld [vmem:[%s4558_s7] ss:$0 sm:$0xff] }
0x28dd   :  { %2552 = vadd.xlane.f32.xlu1 %v2551_v6 }
0x28de   :  { %v2763_v6 = vsel %vm491_vm5, %v2751_v5, 0.0 }
0x28df   :  { %v2529_v7 = vpop.permute.xlu0 %2528 }
0x28e0   :  { %v2554_v8 = vsel %vm491_vm5, %v2529_v7, 0.0  ;;  %v2753_v7 = vmul.f32 %v3551_v45, %v4244_v46 }
0x28e1   :  { %2555 = vadd.xlane.f32.xlu0 %v2554_v8 }
0x28e2   :  { %v2769_v8 = vsel %vm491_vm5, %v2753_v7, 0.0 }
0x28e3   :  { %v2531_v9 = vpop.permute.xlu0 %2530 }
0x28e4   :  { %v2557_v11 = vsel %vm491_vm5, %v2531_v9, 0.0 }
0x28e5   :  { %2558 = vadd.xlane.f32.xlu1 %v2557_v11 }
0x28e7   :  { %v2533_v12 = vpop.permute.xlu0 %2532 }
0x28e8   :  { %v2560_v13 = vsel %vm491_vm5, %v2533_v12, 0.0 }
0x28e9   :  { %2561 = vadd.xlane.f32.xlu0 %v2560_v13 }
0x28eb   :  { %v2535_v15 = vpop.permute.xlu0 %2534 }
0x28ec   :  { %v2563_v16 = vsel %vm491_vm5, %v2535_v15, 0.0 }
0x28ed   :  { %2564 = vadd.xlane.f32.xlu1 %v2563_v16 }
0x28ff   :  { %2478 = vperm.xlu0 %3480, %v4172_v30  }
0x291e   :  { %2689 = vadd.xlane.f32.xlu0 %v2688_v42 }
0x2922   :  { %2692 = vadd.xlane.f32.xlu0 %v2691_v44 }
0x2925   :  { %v4316_v47 = vpop.xlane.xlu0 %2638 }
0x2926   :  { %v2661_v51 = vsub.f32 %v4278_v61, %v4316_v47  ;;  %2698 = vadd.xlane.f32.xlu0 %v2697_v49 }
0x2928   :  { %v2669_v50 = vmul.f32 1.442695, %v2661_v51 }
0x292a   :  { %3556 = vpow2.f32 %v2669_v50  ;;  %2704 = vadd.xlane.f32.xlu0 %v2703_v56 }
0x292b   :  { %3558 = vpow2.f32 %v2679_v48 }
0x292e   :  { %2761 = vadd.xlane.f32.xlu0 %v2760_v59 }
0x2932   :  { %2767 = vadd.xlane.f32.xlu0 %v2766_v60 }
0x2934   :  { %v3557_v62 = vpop.eup %3556 }
0x2935   :  { %v2685_v63 = vsel %vm491_vm5, %v3557_v62, 0.0  ;;  %v4330_v52 = vpop.eup %3558  ;;  %v2749_v4 = vmul.f32 %v3557_v62, %v4278_v61 }
0x2936   :  { %2686 = vadd.xlane.f32.xlu1 %v2685_v63  ;;  %v2700_v3 = vsel %vm491_vm5, %v4330_v52, 0.0  ;;  %v2754_v7 = vmul.f32 %v4330_v52, %v4251_v57 }
0x2937   :  { %v2757_v14 = vsel %vm491_vm5, %v2749_v4, 0.0 }
0x293a   :  { %2695 = vadd.xlane.f32.xlu1 %v2694_v2 }
0x293e   :  { %2701 = vadd.xlane.f32.xlu1 %v2700_v3 }
0x2942   :  { %2758 = vadd.xlane.f32.xlu1 %v2757_v14 }
0x2946   :  { %2764 = vadd.xlane.f32.xlu1 %v2763_v6 }
0x294a   :  { %2770 = vadd.xlane.f32.xlu1 %v2769_v8 }
0x2966   :  { %v4340_v9 = vpop.xlane.xlu0 %2549 }
0x296e   :  { %v4342_v11 = vpop.xlane.xlu0 %2555 }
0x2976   :  { %v4344_v12 = vpop.xlane.xlu0 %2561 }
0x297e   :  { %v4346_v61 = vpop.permute.xlu0 %2478 }
0x29a7   :  { %v2302_v13 = vpop.f32.mrb[18].mxu0 }
0x29a8   :  { %v4351_v15 = vadd.f32 %v3595_v55, %v2302_v13  ;;  %v3294_v46 = vpop.f32.mrb[19].mxu0 }
0x29aa   :  { %2306 = vst.msk [vmem:[%s4562_s11 + $0x38] sm:$0xff] %vm491_vm5, %v4351_v15  ;;  %v2307_v16 = vsel %vm491_vm5, %v4351_v15, -inf }
0x29ab   :  { %v2690_v23 = vpop.xlane.xlu0 %2689  ;;  %2308 = vmax.xlane.f32.xlu1 %v2307_v16  ;;  %v2516_v16 = vadd.f32 %v4346_v61, %v4172_v30 }
0x29ac   :  { %3560 = vlog2.f32 %v2690_v23 }
0x29af   :  { %v3314_v26 = vpop.f32.mrb[22].mxu1  ;;  %v2693_v29 = vpop.xlane.xlu0 %2692  ;;  %2776 = vadd.xlane.f32.xlu1 %v2775_v24 }
0x29b0   :  { %v4363_v32 = vadd.f32 %v3314_v26, %v4166_v25  ;;  %3562 = vlog2.f32 %v2693_v29  ;;  %v2467_v34 = vpop.f32.mrb[23].mxu1 }
0x29b1   :  { %3564 = vrcp.f32 %v2690_v23  ;;  %v4366_v36 = vadd.f32 %v4166_v25, %v2467_v34  ;;  %v4382_v25 = vpop.xlane.xlu1 %2552 }
0x29b2   :  { %2820 = vst.msk [vmem:[%s4566_s15 + $0x38] sm:$0xff] %vm513_vm8, %v4363_v32  ;;  %2538 = vrot.lane.b32.xlu0 %v4363_v32, %s3626_s5 }
0x29b3   :  { %2819 = vst.msk [vmem:[%s4566_s15 + $0x30] sm:$0xff] %vm513_vm8, %v4366_v36  ;;  %v2699_v58 = vpop.xlane.xlu0 %2698 }
0x29b4   :  { %3566 = vlog2.f32 %v2699_v58 }
0x29b5   :  { %v4387_v45 = vpop.xlane.xlu1 %2558 }
0x29b6   :  { %v3561_v38 = vpop.eup %3560  ;;  %2536 = vrot.lane.b32.xlu0 %v4366_v36, %s3626_s5 }
0x29b7   :  { %v2712_v40 = vmul.f32 0.6931472, %v3561_v38  ;;  %v4384_v41 = vpop.xlane.xlu0 %2704 }
0x29b8   :  { %3568 = vlog2.f32 %v4384_v41 }
0x29b9   :  { %v2734_v42 = vsub.f32 0.0, %v2712_v40  ;;  %v2726_v51 = vadd.f32 %v2712_v40, %v4291_v18  ;;  %v4394_v20 = vpop.xlane.xlu1 %2564 }
0x29ba   :  { %v3563_v43 = vpop.eup %3562 }
0x29bb   :  { %v3565_v44 = vpop.eup %3564  ;;  %2742 = vst.msk [vmem:[%s4564_s13 + $0x8] sm:$0xff] %vm513_vm8, %v2734_v42  ;;  %v2714_v49 = vmul.f32 0.6931472, %v3563_v43  ;;  %v2762_v28 = vpop.xlane.xlu0 %2761 }
0x29bc   :  { %v2784_v54 = vmul.f32 %v3565_v44, %v2762_v28 }
0x29bd   :  { %v2735_v50 = vsub.f32 0.0, %v2714_v49  ;;  %v2727_v52 = vadd.f32 %v2714_v49, %v4293_v10 }
0x29be   :  { %v3567_v56 = vpop.eup %3566  ;;  %v2798_v0 = vsub.f32 %v2726_v51, %v2784_v54 }
0x29bf   :  { %2743 = vst.msk [vmem:[%s4564_s13 + $0x10] sm:$0xff] %vm513_vm8, %v2735_v50  ;;  %v2718_v48 = vmul.f32 0.6931472, %v3567_v56  ;;  %v2768_v57 = vpop.xlane.xlu0 %2767 }
0x29c0   :  { %2806 = vst.msk [vmem:[%s4565_s14 + $0x8] sm:$0xff] %vm513_vm8, %v2798_v0  ;;  %2483 = vperm.xlu1 %3481, %v4169_v27  }
0x29c1   :  { %v2737_v18 = vsub.f32 0.0, %v2718_v48  ;;  %v2729_v44 = vadd.f32 %v2718_v48, %v4298_v21 }
0x29c2   :  { %v3569_v59 = vpop.eup %3568 }
0x29c3   :  { %2745 = vst.msk [vmem:[%s4564_s13 + $0x20] sm:$0xff] %vm513_vm8, %v2737_v18  ;;  %v4409_v53 = vmul.f32 0.6931472, %v3569_v59  ;;  %v2687_v60 = vpop.xlane.xlu1 %2686  ;;  %v2574_v59 = vmul.f32 0.0625, %v4382_v25 }
0x29c4   :  { %3570 = vlog2.f32 %v2687_v60  ;;  %2488 = vperm.xlu1 %3481, %v4188_v35  }
0x29c5   :  { %v2739_v62 = vsub.f32 0.0, %v4409_v53  ;;  %3572 = vrcp.f32 %v2687_v60  ;;  %v2731_v56 = vadd.f32 %v4409_v53, %v4308_v31 }
0x29c6   :  { %3574 = vrcp.f32 %v2693_v29  ;;  %v2573_v29 = vmul.f32 0.0625, %v4340_v9 }
0x29c7   :  { %2747 = vst.msk [vmem:[%s4564_s13 + $0x30] sm:$0xff] %vm513_vm8, %v2739_v62  ;;  %v2696_v63 = vpop.xlane.xlu1 %2695 }
0x29c8   :  { %3576 = vlog2.f32 %v2696_v63  ;;  %2493 = vperm.xlu1 %3481, %v4185_v33   ;;  %v2581_v9 = vsub.f32 %v2516_v16, %v2573_v29 }
0x29c9   :  { %3578 = vrcp.f32 %v2696_v63  ;;  %v2575_v63 = vmul.f32 0.0625, %v4342_v11 }
0x29cb   :  { %v4418_v2 = vpop.xlane.xlu1 %2701 }
0x29cc   :  { %3580 = vlog2.f32 %v4418_v2  ;;  %2498 = vperm.xlu1 %3481, %v4205_v39  }
0x29cd   :  { %3582 = vrcp.f32 %v2699_v58 }
0x29ce   :  { %v3571_v3 = vpop.eup %3570  ;;  %3584 = vrcp.f32 %v4384_v41 }
0x29cf   :  { %v3573_v4 = vpop.eup %3572  ;;  %v2710_v14 = vmul.f32 0.6931472, %v3571_v3  ;;  %v2759_v5 = vpop.xlane.xlu1 %2758  ;;  %3586 = vrcp.f32 %v4418_v2  ;;  %v2636_v2 = vld [vmem:[%s4562_s11 + $0x38] sm:$0xff] }
0x29d0   :  { %v2782_v6 = vmul.f32 %v3573_v4, %v2759_v5  ;;  %2503 = vperm.xlu1 %3481, %v4202_v37   ;;  %v3575_v8 = vpop.eup %3574  ;;  %v2576_v4 = vmul.f32 0.0625, %v4387_v45  ;;  %v2658_v16 = vsel %vm491_vm5, %v2636_v2, -inf }
0x29d1   :  { %v2733_v13 = vsub.f32 0.0, %v2710_v14  ;;  %v2725_v55 = vadd.f32 %v2710_v14, %v4316_v47  ;;  %v2772_v47 = vsel %vm491_vm5, %v2754_v7, 0.0 }
0x29d2   :  { %v3577_v46 = vpop.eup %3576 }
0x29d3   :  { %v3579_v22 = vpop.eup %3578  ;;  %2741 = vst.msk [vmem:[%s4564_s13] sm:$0xff] %vm513_vm8, %v2733_v13  ;;  %v2716_v23 = vmul.f32 0.6931472, %v3577_v46  ;;  %v2797_v24 = vsub.f32 %v2725_v55, %v2782_v6  ;;  %v2765_v26 = vpop.xlane.xlu1 %2764 }
0x29d4   :  { %v2786_v34 = vmul.f32 %v3575_v8, %v2765_v26  ;;  %2513 = vperm.xlu1 %3481, %v4363_v32   ;;  %v2788_v58 = vmul.f32 %v3579_v22, %v2768_v57 }
0x29d5   :  { %v2728_v30 = vadd.f32 %v2716_v23, %v4295_v1  ;;  %v2736_v61 = vsub.f32 0.0, %v2716_v23  ;;  %2805 = vst.msk [vmem:[%s4565_s14] sm:$0xff] %vm513_vm8, %v2797_v24  ;;  %2773 = vadd.xlane.f32.xlu0 %v2772_v47 }
0x29d6   :  { %v3581_v38 = vpop.eup %3580  ;;  %v2799_v40 = vsub.f32 %v2727_v52, %v2786_v34 }
0x29d7   :  { %v3583_v42 = vpop.eup %3582  ;;  %2744 = vst.msk [vmem:[%s4564_s13 + $0x18] sm:$0xff] %vm513_vm8, %v2736_v61  ;;  %v2800_v10 = vsub.f32 %v2728_v30, %v2788_v58  ;;  %v2720_v43 = vmul.f32 0.6931472, %v3581_v38  ;;  %v2771_v1 = vpop.xlane.xlu1 %2770 }
0x29d8   :  { %2807 = vst.msk [vmem:[%s4565_s14 + $0x10] sm:$0xff] %vm513_vm8, %v2799_v40  ;;  %v2790_v49 = vmul.f32 %v3583_v42, %v2771_v1  ;;  %2597 = vrot.lane.b32.xlu1 %v2581_v9, %s3626_s5  ;;  %v3585_v54 = vpop.eup %3584 }
0x29d9   :  { %2808 = vst.msk [vmem:[%s4565_s14 + $0x18] sm:$0xff] %vm513_vm8, %v2800_v10  ;;  %v2738_v28 = vsub.f32 0.0, %v2720_v43  ;;  %v3587_v8 = vpop.eup %3586 }
0x29da   :  { %v2801_v51 = vsub.f32 %v2729_v44, %v2790_v49 }
0x29db   :  { %2746 = vst.msk [vmem:[%s4564_s13 + $0x28] sm:$0xff] %vm513_vm8, %v2738_v28 }
0x29dc   :  { %2809 = vst.msk [vmem:[%s4565_s14 + $0x20] sm:$0xff] %vm513_vm8, %v2801_v51 }
0x2a24   :  { %v2539_v7 = vpop.permute.xlu0 %2538 }
0x2a25   :  { %v2569_v57 = vsel %vm491_vm5, %v2539_v7, 0.0 }
0x2a38   :  { %v2309_v21 = vpop.xlane.xlu1 %2308 }
0x2a39   :  { %vm2310_vm1 = vcmp.ge.f32.partialorder %v4351_v15, %v2309_v21 }
0x2a3a   :  { %v2311_v24 = vsel %vm2310_vm1, %v3772_v19, 16 }
0x2a3b   :  { %v2312_v26 = vsel %vm491_vm5, %v2311_v24, 2147483647 }
0x2a3c   :  { %v2777_v50 = vpop.xlane.xlu1 %2776  ;;  %v2314_v29 = vshra.s32 %v2312_v26, 16  ;;  %v2313_v10 = vand.u32 65535, %v2312_v26 }
0x2a3d   :  { %v2794_v0 = vmul.f32 %v3585_v54, %v2777_v50 }
0x2a3e   :  { %v2316_v52 = vcvt.s32.f32 %v2314_v29  ;;  %v2315_v51 = vcvt.s32.f32 %v2313_v10 }
0x2a3f   :  { %v2803_v48 = vsub.f32 %v2731_v56, %v2794_v0 }
0x2a40   :  { %v2484_v18 = vpop.permute.xlu1 %2483 }
0x2a41   :  { %2811 = vst.msk [vmem:[%s4565_s14 + $0x30] sm:$0xff] %vm513_vm8, %v2803_v48  ;;  %v2517_v60 = vadd.f32 %v2484_v18, %v4169_v27 }
0x2a43   :  { %v2582_v62 = vsub.f32 %v2517_v60, %v2574_v59 }
0x2a44   :  { %v2489_v41 = vpop.permute.xlu1 %2488 }
0x2a45   :  { %v2518_v3 = vadd.f32 %v2489_v41, %v4188_v35  ;;  %2599 = vrot.lane.b32.xlu0 %v2582_v62, %s3626_s5  ;;  %v2537_v35 = vpop.permute.xlu0 %2536 }
0x2a46   :  { %v2566_v55 = vsel %vm491_vm5, %v2537_v35, 0.0 }
0x2a47   :  { %v2583_v31 = vsub.f32 %v2518_v3, %v2575_v63 }
0x2a48   :  { %v2494_v53 = vpop.permute.xlu1 %2493 }
0x2a49   :  { %v2519_v25 = vadd.f32 %v2494_v53, %v4185_v33  ;;  %2601 = vrot.lane.b32.xlu1 %v2583_v31, %s3626_s5  ;;  %v2730_v33 = vadd.f32 %v2720_v43, %v4302_v17  ;;  %v2577_v17 = vmul.f32 0.0625, %v4344_v12  ;;  %v2578_v12 = vmul.f32 0.0625, %v4394_v20 }
0x2a4b   :  { %v2584_v14 = vsub.f32 %v2519_v25, %v2576_v4 }
0x2a4c   :  { %v2499_v5 = vpop.permute.xlu1 %2498 }
0x2a4d   :  { %v2520_v22 = vadd.f32 %v2499_v5, %v4205_v39 }
0x2a4f   :  { %v2585_v23 = vsub.f32 %v2520_v22, %v2577_v17 }
0x2a50   :  { %v2504_v6 = vpop.permute.xlu1 %2503 }
0x2a51   :  { %v2521_v39 = vadd.f32 %v2504_v6, %v4202_v37 }
0x2a53   :  { %v2586_v19 = vsub.f32 %v2521_v39, %v2578_v12 }
0x2a54   :  { %v2514_v27 = vpop.permute.xlu1 %2513 }
0x2a55   :  { %v2523_v1 = vadd.f32 %v2514_v27, %v4363_v32 }
0x2a58   :  { %v2598_v11 = vpop.permute.xlu1 %2597 }
0x2a59   :  { %2621 = vst.msk [vmem:[%s4563_s12] sm:$0xff] %vm491_vm5, %v2598_v11 }
0x2a62   :  { %v2774_v45 = vpop.xlane.xlu0 %2773 }
0x2a63   :  { %v2792_v13 = vmul.f32 %v3587_v8, %v2774_v45 }
0x2a64   :  { %2567 = vadd.xlane.f32.xlu0 %v2566_v55 }
0x2a65   :  { %v2802_v46 = vsub.f32 %v2730_v33, %v2792_v13 }
0x2a67   :  { %2810 = vst.msk [vmem:[%s4565_s14 + $0x28] sm:$0xff] %vm513_vm8, %v2802_v46 }
0x2a6d   :  { %2659 = vmax.xlane.f32.xlu1 %v2658_v16 }
0x2a7a   :  { %2605 = vrot.lane.b32.xlu0 %v2585_v23, %s3626_s5 }
0x2a7e   :  { %2508 = vperm.xlu1 %3481, %v4366_v36  }
0x2aa2   :  { %2570 = vadd.xlane.f32.xlu1 %v2569_v57 }
0x2aa6   :  { %2317 = vmin.xlane.f32.xlu1 %v2316_v52 }
0x2ab7   :  { %v2600_v34 = vpop.permute.xlu0 %2599  ;;  %2603 = vrot.lane.b32.xlu1 %v2584_v14, %s3626_s5 }
0x2ab8   :  { %2622 = vst.msk [vmem:[%s4563_s12 + $0x8] sm:$0xff] %vm491_vm5, %v2600_v34 }
0x2abb   :  { %v2602_v15 = vpop.permute.xlu1 %2601  ;;  %2607 = vrot.lane.b32.xlu1 %v2586_v19, %s3626_s5 }
0x2abc   :  { %2623 = vst.msk [vmem:[%s4563_s12 + $0x10] sm:$0xff] %vm491_vm5, %v2602_v15 }
0x2af1   :  { %v2568_v37 = vpop.xlane.xlu0 %2567 }
0x2af2   :  { %v2579_v56 = vmul.f32 0.0625, %v2568_v37 }
0x2af5   :  { %v2606_v47 = vpop.permute.xlu0 %2605 }
0x2af6   :  { %2625 = vst.msk [vmem:[%s4563_s12 + $0x20] sm:$0xff] %vm491_vm5, %v2606_v47 }
0x2afa   :  { %v2660_v20 = vpop.xlane.xlu1 %2659 }
0x2afb   :  { %v2668_v30 = vsub.f32 %v2636_v2, %v2660_v20 }
0x2afd   :  { %v2683_v61 = vmul.f32 1.442695, %v2668_v30 }
0x2afe   :  { %v2509_v42 = vpop.permute.xlu1 %2508 }
0x2aff   :  { %3588 = vpow2.f32 %v2683_v61  ;;  %v2522_v32 = vadd.f32 %v2509_v42, %v4366_v36 }
0x2b01   :  { %v2587_v0 = vsub.f32 %v2522_v32, %v2579_v56 }
0x2b09   :  { %v3589_v58 = vpop.eup %3588 }
0x2b0a   :  { %v2706_v38 = vsel %vm491_vm5, %v3589_v58, 0.0  ;;  %v2756_v9 = vmul.f32 %v3589_v58, %v2636_v2 }
0x2b0b   :  { %2707 = vadd.xlane.f32.xlu1 %v2706_v38 }
0x2b0c   :  { %v2778_v40 = vsel %vm491_vm5, %v2756_v9, 0.0 }
0x2b0d   :  { %2779 = vadd.xlane.f32.xlu0 %v2778_v40 }
0x2b2f   :  { %v2571_v43 = vpop.xlane.xlu1 %2570 }
0x2b30   :  { %v2580_v44 = vmul.f32 0.0625, %v2571_v43 }
0x2b32   :  { %v2588_v49 = vsub.f32 %v2523_v1, %v2580_v44 }
0x2b33   :  { %v2318_v28 = vpop.xlane.xlu1 %2317 }
0x2b34   :  { %vm2319_vm4 = vcmp.eq.f32.partialorder %v2316_v52, %v2318_v28  ;;  %2611 = vrot.lane.b32.xlu1 %v2588_v49, %s3626_s5  ;;  %v2324_v53 = vcvt.f32.s32 %v2318_v28 }
0x2b35   :  { %v2320_v21 = vsel %vm2319_vm4, %v2315_v51, inf }
0x2b36   :  { %2321 = vmin.xlane.f32.xlu0 %v2320_v21  ;;  %v2325_v25 = vshll.u32 %v2324_v53, 16 }
0x2b37   :  { %v2604_v54 = vpop.permute.xlu1 %2603 }
0x2b38   :  { %2624 = vst.msk [vmem:[%s4563_s12 + $0x18] sm:$0xff] %vm491_vm5, %v2604_v54 }
0x2b3b   :  { %v2608_v50 = vpop.permute.xlu1 %2607 }
0x2b3c   :  { %2626 = vst.msk [vmem:[%s4563_s12 + $0x28] sm:$0xff] %vm491_vm5, %v2608_v50 }
0x2b4c   :  { %2609 = vrot.lane.b32.xlu0 %v2587_v0, %s3626_s5 }
0x2b98   :  { %v2708_v48 = vpop.xlane.xlu1 %2707 }
0x2b99   :  { %3590 = vlog2.f32 %v2708_v48 }
0x2b9a   :  { %3592 = vrcp.f32 %v2708_v48  ;;  %v2780_v62 = vpop.xlane.xlu0 %2779 }
0x2ba3   :  { %v3591_v18 = vpop.eup %3590 }
0x2ba4   :  { %v3593_v59 = vpop.eup %3592  ;;  %v2724_v60 = vmul.f32 0.6931472, %v3591_v18 }
0x2ba5   :  { %v2796_v3 = vmul.f32 %v3593_v59, %v2780_v62 }
0x2ba6   :  { %v2740_v41 = vsub.f32 0.0, %v2724_v60  ;;  %v2732_v63 = vadd.f32 %v2724_v60, %v2660_v20  ;;  %v2612_v31 = vpop.permute.xlu1 %2611 }
0x2ba7   :  { %2628 = vst.msk [vmem:[%s4563_s12 + $0x38] sm:$0xff] %vm491_vm5, %v2612_v31 }
0x2ba8   :  { %2748 = vst.msk [vmem:[%s4564_s13 + $0x38] sm:$0xff] %vm513_vm8, %v2740_v41  ;;  %v2804_v36 = vsub.f32 %v2732_v63, %v2796_v3 }
0x2baa   :  { %2812 = vst.msk [vmem:[%s4565_s14 + $0x38] sm:$0xff] %vm513_vm8, %v2804_v36 }
0x2bc3   :  { %v2322_v4 = vpop.xlane.xlu0 %2321 }
0x2bc4   :  { %v2323_v14 = vcvt.f32.s32 %v2322_v4 }
0x2bc6   :  { %v2326_v5 = vadd.s32 %v2325_v25, %v2323_v14 }
0x2bc7   :  { %v2610_v6 = vpop.permute.xlu0 %2609 }
0x2bc8   :  { %2327 = vst.msk [vmem:[%s4561_s10 + $0x38] sm:$0xff] %vm513_vm8, %v2326_v5 }
0x2bc9   :  { %2627 = vst.msk [vmem:[%s4563_s12 + $0x30] sm:$0xff] %vm491_vm5, %v2610_v6 }
0x2bca   :  { %2845 = vsyncpa [#allocation4], 1 }

</bundles_post_ra>
